<compile_context>
chip_gen: v6e
topology: v6e:2x2x1
jax: 0.10.0
libtpu: 0.0.40
codegen_flags: <defaults>
</compile_context>

<pallas_src>
import numpy as np
import jax
import jax.numpy as jnp
from jax import lax
from jax.experimental import pallas as pl
from jax.experimental.pallas import tpu as pltpu


# ----------------------------------------------------------------------------- forward
def encoder_cnn_medium_forward(obs, params, *, eps=1e-5):
    """obs: (B, Cin, H, W) float32.  Returns (B, num_objects, H//5, W//5)."""
    B, Cin, H, W = obs.shape
    Cmid = params["w1"].shape[0]
    Cout = params["w2"].shape[0]
    KH1 = KW1 = 9
    KH2 = KW2 = 5
    stride2 = 5

    Ho = (H - KH2) // stride2 + 1
    Wo = (W - KW2) // stride2 + 1
    Hu, Wu = Ho * stride2, Wo * stride2          # conv1 pixels actually consumed by conv2
    K1 = KH1 * KW1 * Cin                          # conv1 patch width (243 for Cin=3)
    P2 = KH2 * KW2                                # 25 positions inside a conv2 patch
    HoWo = Ho * Wo                                # conv2 output pixels per batch element
    M = P2 * HoWo                                 # conv1 rows per batch element

    # ---- wrapper-side im2col for conv1 (XLA glue), rows pre-ordered for conv2
    x = jnp.transpose(obs, (0, 2, 3, 1)).astype(jnp.float32)       # (B,H,W,Cin)
    xp = jnp.pad(x, ((0, 0), (4, 4), (4, 4), (0, 0)))              # pad=4
    slabs = [xp[:, ky:ky + Hu, kx:kx + Wu, :]
             for ky in range(KH1) for kx in range(KW1)]            # (B,Hu,Wu,Cin) each
    patches = jnp.concatenate(slabs, axis=-1)                      # (B,Hu,Wu,K1), cols (ky,kx,cin)
    # row order (ky2, kx2, oy, ox): group j = ky2*5+kx2 owns rows j*HoWo .. j*HoWo+HoWo
    patches = patches.reshape(B, Ho, stride2, Wo, stride2, K1)
    patches = patches.transpose(0, 2, 4, 1, 3, 5).reshape(B, M, K1)

    # conv1 weights -> (K1, Cmid) in (ky, kx, cin) order to match the patches
    w1m = jnp.transpose(params["w1"], (2, 3, 1, 0)).reshape(K1, Cmid).astype(jnp.float32)

    # fold conv1 bias + eval-mode BatchNorm into per-channel scale / bias
    inv_std = 1.0 / jnp.sqrt(params["bn_var"] + eps)
    scale = (params["bn_gamma"] * inv_std).astype(jnp.float32)
    bias = (params["bn_beta"] + scale * (params["b1"] - params["bn_mean"])).astype(jnp.float32)
    scale = scale.reshape(1, Cmid)
    bias = bias.reshape(1, Cmid)

    # conv2 weights -> (25, Cmid, Cout), index j = ky2*5 + kx2
    w2r = jnp.transpose(params["w2"], (2, 3, 1, 0)).reshape(P2, Cmid, Cout).astype(jnp.float32)
    b2 = params["b2"].reshape(1, Cout).astype(jnp.float32)

    def fused_kernel(p_ref, w1_ref, s_ref, b_ref, w2_ref, b2_ref, o_ref, h_ref):
        # p_ref : (1, M, K1) conv1 patches (conv2-patch row order) for this batch elem
        # w1_ref: (K1, Cmid)   s_ref/b_ref: (1, Cmid) folded BN scale/bias
        # w2_ref: (P2, Cmid, Cout)   b2_ref: (1, Cout)
        # o_ref : (1, HoWo, Cout)    h_ref: (M, Cmid) VMEM scratch (activation)
        h = jnp.dot(p_ref[0], w1_ref[...], preferred_element_type=jnp.float32)
        h = h * s_ref[...] + b_ref[...]
        h_ref[...] = jnp.where(h >= 0.0, h, 0.01 * h)              # LeakyReLU(0.01)

        # conv2 (kernel 5, stride 5): 25 small GEMMs over contiguous row groups
        acc = jnp.zeros((HoWo, Cout), dtype=jnp.float32)
        for j in range(P2):
            acc = acc + jnp.dot(h_ref[j * HoWo:(j + 1) * HoWo, :], w2_ref[j],
                                preferred_element_type=jnp.float32)
        acc = acc + b2_ref[...]
        # sigmoid via tanh: single EUP transcendental, no VPU divide
        o_ref[0] = 0.5 * jnp.tanh(0.5 * acc) + 0.5

    out = pl.pallas_call(
        fused_kernel,
        out_shape=jax.ShapeDtypeStruct((B, HoWo, Cout), jnp.float32),
        grid=(B,),
        in_specs=[
            pl.BlockSpec((1, M, K1), lambda b: (b, 0, 0)),
            pl.BlockSpec((K1, Cmid), lambda b: (0, 0)),
            pl.BlockSpec((1, Cmid), lambda b: (0, 0)),
            pl.BlockSpec((1, Cmid), lambda b: (0, 0)),
            pl.BlockSpec((P2, Cmid, Cout), lambda b: (0, 0, 0)),
            pl.BlockSpec((1, Cout), lambda b: (0, 0)),
        ],
        out_specs=pl.BlockSpec((1, HoWo, Cout), lambda b: (b, 0, 0)),
        scratch_shapes=[pltpu.VMEM((M, Cmid), jnp.float32)],
        compiler_params=pltpu.CompilerParams(dimension_semantics=("parallel",)),
    )(patches, w1m, scale, bias, w2r, b2)

    out = out.reshape(B, Ho, Wo, Cout)
    return jnp.transpose(out, (0, 3, 1, 2))                        # NCHW


# ----------------------------------------------------------------------------- params / reference
def init_params(key, input_dim, hidden_dim, num_objects):
    """Deterministic init matching nn.Conv2d / nn.BatchNorm2d shapes (PyTorch layout)."""
    ks = jax.random.split(key, 8)
    fan1 = input_dim * 9 * 9
    lim1 = 1.0 / np.sqrt(fan1)
    w1 = jax.random.uniform(ks[0], (hidden_dim, input_dim, 9, 9), jnp.float32, -lim1, lim1)
    b1 = jax.random.uniform(ks[1], (hidden_dim,), jnp.float32, -lim1, lim1)
    fan2 = hidden_dim * 5 * 5
    lim2 = 1.0 / np.sqrt(fan2)
    w2 = jax.random.uniform(ks[2], (num_objects, hidden_dim, 5, 5), jnp.float32, -lim2, lim2)
    b2 = jax.random.uniform(ks[3], (num_objects,), jnp.float32, -lim2, lim2)
    bn_gamma = jax.random.uniform(ks[4], (hidden_dim,), jnp.float32, 0.5, 1.5)
    bn_beta = 0.1 * jax.random.normal(ks[5], (hidden_dim,), jnp.float32)
    bn_mean = 0.1 * jax.random.normal(ks[6], (hidden_dim,), jnp.float32)
    bn_var = jax.random.uniform(ks[7], (hidden_dim,), jnp.float32, 0.5, 1.5)
    return dict(w1=w1, b1=b1, w2=w2, b2=b2,
                bn_gamma=bn_gamma, bn_beta=bn_beta, bn_mean=bn_mean, bn_var=bn_var)


def reference_forward(obs, params, eps=1e-5):
    """Pure-JAX reference of the PyTorch forward (eval-mode BatchNorm)."""
    dn = ("NCHW", "OIHW", "NCHW")
    h = lax.conv_general_dilated(obs, params["w1"], (1, 1), ((4, 4), (4, 4)),
                                 dimension_numbers=dn, precision=lax.Precision.HIGHEST)
    h = h + params["b1"][None, :, None, None]
    h = (params["bn_gamma"][None, :, None, None]
         * (h - params["bn_mean"][None, :, None, None])
         / jnp.sqrt(params["bn_var"][None, :, None, None] + eps)
         + params["bn_beta"][None, :, None, None])
    h = jnp.where(h >= 0.0, h, 0.01 * h)                           # LeakyReLU(0.01)
    h = lax.conv_general_dilated(h, params["w2"], (5, 5), ((0, 0), (0, 0)),
                                 dimension_numbers=dn, precision=lax.Precision.HIGHEST)
    h = h + params["b2"][None, :, None, None]
    return jax.nn.sigmoid(h)


# ----------------------------------------------------------------------------- main
if __name__ == "__main__":
    input_dim = 3        # observation channels
    hidden_dim = 32
    num_objects = 4
    batch, H, W = 2, 10, 10

    key = jax.random.PRNGKey(0)
    k_x, k_p = jax.random.split(key)
    obs = jax.random.normal(k_x, (batch, input_dim, H, W), dtype=jnp.float32)
    params = init_params(k_p, input_dim, hidden_dim, num_objects)

    out = jax.jit(encoder_cnn_medium_forward)(obs, params)
    out = jax.block_until_ready(out)

    ref = reference_forward(obs, params)
    np.testing.assert_allclose(np.asarray(out), np.asarray(ref), rtol=1e-4, atol=1e-4)

    assert out.shape == (batch, num_objects, H // 5, W // 5)
    print("KERNEL_OK")
</pallas_src>

<mosaic_0001>
module attributes {stable_mosaic.version = 11 : i64} {
  func.func @fused_kernel(%arg0: i32, %arg1: memref<1x100x243xf32, #tpu.memory_space<vmem>>, %arg2: memref<243x32xf32, #tpu.memory_space<vmem>>, %arg3: memref<1x32xf32, #tpu.memory_space<vmem>>, %arg4: memref<1x32xf32, #tpu.memory_space<vmem>>, %arg5: memref<25x32x4xf32, #tpu.memory_space<vmem>>, %arg6: memref<1x4xf32, #tpu.memory_space<vmem>>, %arg7: memref<1x4x4xf32, #tpu.memory_space<vmem>>, %arg8: memref<100x32xf32, #tpu.memory_space<vmem>>) attributes {dimension_semantics = [#tpu.dimension_semantics<parallel>], iteration_bounds = array<i64: 2>, scalar_prefetch = 0 : i64, scratch_operands = 1 : i64, tpu.core_type = #tpu.core_type<tc>, window_params = [{transform_indices = @transform_0, window_bounds = array<i64: 1, 100, 243>}, {pipeline_mode = #tpu.pipeline_mode<synchronous>, transform_indices = @transform_1, window_bounds = array<i64: 243, 32>}, {pipeline_mode = #tpu.pipeline_mode<synchronous>, transform_indices = @transform_2, window_bounds = array<i64: 1, 32>}, {pipeline_mode = #tpu.pipeline_mode<synchronous>, transform_indices = @transform_3, window_bounds = array<i64: 1, 32>}, {pipeline_mode = #tpu.pipeline_mode<synchronous>, transform_indices = @transform_4, window_bounds = array<i64: 25, 32, 4>}, {pipeline_mode = #tpu.pipeline_mode<synchronous>, transform_indices = @transform_5, window_bounds = array<i64: 1, 4>}, {transform_indices = @transform_6, window_bounds = array<i64: 1, 4, 4>}]} {
    %c0 = arith.constant 0 : index
    %c0_0 = arith.constant 0 : index
    %c0_1 = arith.constant 0 : index
    %0 = vector.load %arg1[%c0, %c0_0, %c0_1] : memref<1x100x243xf32, #tpu.memory_space<vmem>>, vector<1x100x243xf32>
    %1 = vector.shape_cast %0 : vector<1x100x243xf32> to vector<100x243xf32>
    %c0_2 = arith.constant 0 : index
    %c0_3 = arith.constant 0 : index
    %2 = vector.load %arg2[%c0_2, %c0_3] : memref<243x32xf32, #tpu.memory_space<vmem>>, vector<243x32xf32>
    %cst = arith.constant dense<0.000000e+00> : vector<100x32xf32>
    %3 = tpu.matmul %1, %2, %cst {dimension_numbers = #tpu.dot_dimension_numbers<[1], [0], [0], [1], [0, 0, 1, 1], [], []>} : vector<100x243xf32>, vector<243x32xf32>, vector<100x32xf32> -> vector<100x32xf32>
    %c0_4 = arith.constant 0 : index
    %c0_5 = arith.constant 0 : index
    %4 = vector.load %arg3[%c0_4, %c0_5] : memref<1x32xf32, #tpu.memory_space<vmem>>, vector<1x32xf32>
    %5 = vector.broadcast %4 : vector<1x32xf32> to vector<100x32xf32>
    %6 = arith.mulf %3, %5 : vector<100x32xf32>
    %c0_6 = arith.constant 0 : index
    %c0_7 = arith.constant 0 : index
    %7 = vector.load %arg4[%c0_6, %c0_7] : memref<1x32xf32, #tpu.memory_space<vmem>>, vector<1x32xf32>
    %8 = vector.broadcast %7 : vector<1x32xf32> to vector<100x32xf32>
    %9 = arith.addf %6, %8 : vector<100x32xf32>
    %cst_8 = arith.constant 0.000000e+00 : f32
    %10 = vector.broadcast %cst_8 : f32 to vector<100x32xf32>
    %11 = arith.cmpf oge, %9, %10 : vector<100x32xf32>
    %cst_9 = arith.constant 0.00999999977 : f32
    %12 = vector.broadcast %cst_9 : f32 to vector<100x32xf32>
    %13 = arith.mulf %12, %9 : vector<100x32xf32>
    %14 = arith.select %11, %9, %13 : vector<100x32xi1>, vector<100x32xf32>
    %c0_10 = arith.constant 0 : index
    %c0_11 = arith.constant 0 : index
    %15 = vector.load %arg8[%c0_10, %c0_11] : memref<100x32xf32, #tpu.memory_space<vmem>>, vector<100x32xf32>
    tpu.vector_store %arg8[%c0_10, %c0_11], %14 {strides = array<i32>} : memref<100x32xf32, #tpu.memory_space<vmem>>, vector<100x32xf32>,
    %cst_12 = arith.constant 0.000000e+00 : f32
    %16 = vector.broadcast %cst_12 : f32 to vector<4x4xf32>
    %c0_13 = arith.constant 0 : index
    %c0_14 = arith.constant 0 : index
    %17 = vector.load %arg8[%c0_13, %c0_14] : memref<100x32xf32, #tpu.memory_space<vmem>>, vector<4x32xf32>
    %c0_15 = arith.constant 0 : index
    %c0_16 = arith.constant 0 : index
    %c0_17 = arith.constant 0 : index
    %18 = vector.load %arg5[%c0_15, %c0_16, %c0_17] : memref<25x32x4xf32, #tpu.memory_space<vmem>>, vector<1x32x4xf32>
    %19 = vector.shape_cast %18 : vector<1x32x4xf32> to vector<32x4xf32>
    %cst_18 = arith.constant dense<0.000000e+00> : vector<4x4xf32>
    %20 = tpu.matmul %17, %19, %cst_18 {dimension_numbers = #tpu.dot_dimension_numbers<[1], [0], [0], [1], [0, 0, 1, 1], [], []>} : vector<4x32xf32>, vector<32x4xf32>, vector<4x4xf32> -> vector<4x4xf32>
    %21 = arith.addf %16, %20 : vector<4x4xf32>
    %c4 = arith.constant 4 : index
    %c0_19 = arith.constant 0 : index
    %22 = vector.load %arg8[%c4, %c0_19] : memref<100x32xf32, #tpu.memory_space<vmem>>, vector<4x32xf32>
    %c1 = arith.constant 1 : index
    %c0_20 = arith.constant 0 : index
    %c0_21 = arith.constant 0 : index
    %23 = vector.load %arg5[%c1, %c0_20, %c0_21] : memref<25x32x4xf32, #tpu.memory_space<vmem>>, vector<1x32x4xf32>
    %24 = vector.shape_cast %23 : vector<1x32x4xf32> to vector<32x4xf32>
    %cst_22 = arith.constant dense<0.000000e+00> : vector<4x4xf32>
    %25 = tpu.matmul %22, %24, %cst_22 {dimension_numbers = #tpu.dot_dimension_numbers<[1], [0], [0], [1], [0, 0, 1, 1], [], []>} : vector<4x32xf32>, vector<32x4xf32>, vector<4x4xf32> -> vector<4x4xf32>
    %26 = arith.addf %21, %25 : vector<4x4xf32>
    %c8 = arith.constant 8 : index
    %c0_23 = arith.constant 0 : index
    %27 = vector.load %arg8[%c8, %c0_23] : memref<100x32xf32, #tpu.memory_space<vmem>>, vector<4x32xf32>
    %c2 = arith.constant 2 : index
    %c0_24 = arith.constant 0 : index
    %c0_25 = arith.constant 0 : index
    %28 = vector.load %arg5[%c2, %c0_24, %c0_25] : memref<25x32x4xf32, #tpu.memory_space<vmem>>, vector<1x32x4xf32>
    %29 = vector.shape_cast %28 : vector<1x32x4xf32> to vector<32x4xf32>
    %cst_26 = arith.constant dense<0.000000e+00> : vector<4x4xf32>
    %30 = tpu.matmul %27, %29, %cst_26 {dimension_numbers = #tpu.dot_dimension_numbers<[1], [0], [0], [1], [0, 0, 1, 1], [], []>} : vector<4x32xf32>, vector<32x4xf32>, vector<4x4xf32> -> vector<4x4xf32>
    %31 = arith.addf %26, %30 : vector<4x4xf32>
    %c12 = arith.constant 12 : index
    %c0_27 = arith.constant 0 : index
    %32 = vector.load %arg8[%c12, %c0_27] : memref<100x32xf32, #tpu.memory_space<vmem>>, vector<4x32xf32>
    %c3 = arith.constant 3 : index
    %c0_28 = arith.constant 0 : index
    %c0_29 = arith.constant 0 : index
    %33 = vector.load %arg5[%c3, %c0_28, %c0_29] : memref<25x32x4xf32, #tpu.memory_space<vmem>>, vector<1x32x4xf32>
    %34 = vector.shape_cast %33 : vector<1x32x4xf32> to vector<32x4xf32>
    %cst_30 = arith.constant dense<0.000000e+00> : vector<4x4xf32>
    %35 = tpu.matmul %32, %34, %cst_30 {dimension_numbers = #tpu.dot_dimension_numbers<[1], [0], [0], [1], [0, 0, 1, 1], [], []>} : vector<4x32xf32>, vector<32x4xf32>, vector<4x4xf32> -> vector<4x4xf32>
    %36 = arith.addf %31, %35 : vector<4x4xf32>
    %c16 = arith.constant 16 : index
    %c0_31 = arith.constant 0 : index
    %37 = vector.load %arg8[%c16, %c0_31] : memref<100x32xf32, #tpu.memory_space<vmem>>, vector<4x32xf32>
    %c4_32 = arith.constant 4 : index
    %c0_33 = arith.constant 0 : index
    %c0_34 = arith.constant 0 : index
    %38 = vector.load %arg5[%c4_32, %c0_33, %c0_34] : memref<25x32x4xf32, #tpu.memory_space<vmem>>, vector<1x32x4xf32>
    %39 = vector.shape_cast %38 : vector<1x32x4xf32> to vector<32x4xf32>
    %cst_35 = arith.constant dense<0.000000e+00> : vector<4x4xf32>
    %40 = tpu.matmul %37, %39, %cst_35 {dimension_numbers = #tpu.dot_dimension_numbers<[1], [0], [0], [1], [0, 0, 1, 1], [], []>} : vector<4x32xf32>, vector<32x4xf32>, vector<4x4xf32> -> vector<4x4xf32>
    %41 = arith.addf %36, %40 : vector<4x4xf32>
    %c20 = arith.constant 20 : index
    %c0_36 = arith.constant 0 : index
    %42 = vector.load %arg8[%c20, %c0_36] : memref<100x32xf32, #tpu.memory_space<vmem>>, vector<4x32xf32>
    %c5 = arith.constant 5 : index
    %c0_37 = arith.constant 0 : index
    %c0_38 = arith.constant 0 : index
    %43 = vector.load %arg5[%c5, %c0_37, %c0_38] : memref<25x32x4xf32, #tpu.memory_space<vmem>>, vector<1x32x4xf32>
    %44 = vector.shape_cast %43 : vector<1x32x4xf32> to vector<32x4xf32>
    %cst_39 = arith.constant dense<0.000000e+00> : vector<4x4xf32>
    %45 = tpu.matmul %42, %44, %cst_39 {dimension_numbers = #tpu.dot_dimension_numbers<[1], [0], [0], [1], [0, 0, 1, 1], [], []>} : vector<4x32xf32>, vector<32x4xf32>, vector<4x4xf32> -> vector<4x4xf32>
    %46 = arith.addf %41, %45 : vector<4x4xf32>
    %c24 = arith.constant 24 : index
    %c0_40 = arith.constant 0 : index
    %47 = vector.load %arg8[%c24, %c0_40] : memref<100x32xf32, #tpu.memory_space<vmem>>, vector<4x32xf32>
    %c6 = arith.constant 6 : index
    %c0_41 = arith.constant 0 : index
    %c0_42 = arith.constant 0 : index
    %48 = vector.load %arg5[%c6, %c0_41, %c0_42] : memref<25x32x4xf32, #tpu.memory_space<vmem>>, vector<1x32x4xf32>
    %49 = vector.shape_cast %48 : vector<1x32x4xf32> to vector<32x4xf32>
    %cst_43 = arith.constant dense<0.000000e+00> : vector<4x4xf32>
    %50 = tpu.matmul %47, %49, %cst_43 {dimension_numbers = #tpu.dot_dimension_numbers<[1], [0], [0], [1], [0, 0, 1, 1], [], []>} : vector<4x32xf32>, vector<32x4xf32>, vector<4x4xf32> -> vector<4x4xf32>
    %51 = arith.addf %46, %50 : vector<4x4xf32>
    %c28 = arith.constant 28 : index
    %c0_44 = arith.constant 0 : index
    %52 = vector.load %arg8[%c28, %c0_44] : memref<100x32xf32, #tpu.memory_space<vmem>>, vector<4x32xf32>
    %c7 = arith.constant 7 : index
    %c0_45 = arith.constant 0 : index
    %c0_46 = arith.constant 0 : index
    %53 = vector.load %arg5[%c7, %c0_45, %c0_46] : memref<25x32x4xf32, #tpu.memory_space<vmem>>, vector<1x32x4xf32>
    %54 = vector.shape_cast %53 : vector<1x32x4xf32> to vector<32x4xf32>
    %cst_47 = arith.constant dense<0.000000e+00> : vector<4x4xf32>
    %55 = tpu.matmul %52, %54, %cst_47 {dimension_numbers = #tpu.dot_dimension_numbers<[1], [0], [0], [1], [0, 0, 1, 1], [], []>} : vector<4x32xf32>, vector<32x4xf32>, vector<4x4xf32> -> vector<4x4xf32>
    %56 = arith.addf %51, %55 : vector<4x4xf32>
    %c32 = arith.constant 32 : index
    %c0_48 = arith.constant 0 : index
    %57 = vector.load %arg8[%c32, %c0_48] : memref<100x32xf32, #tpu.memory_space<vmem>>, vector<4x32xf32>
    %c8_49 = arith.constant 8 : index
    %c0_50 = arith.constant 0 : index
    %c0_51 = arith.constant 0 : index
    %58 = vector.load %arg5[%c8_49, %c0_50, %c0_51] : memref<25x32x4xf32, #tpu.memory_space<vmem>>, vector<1x32x4xf32>
    %59 = vector.shape_cast %58 : vector<1x32x4xf32> to vector<32x4xf32>
    %cst_52 = arith.constant dense<0.000000e+00> : vector<4x4xf32>
    %60 = tpu.matmul %57, %59, %cst_52 {dimension_numbers = #tpu.dot_dimension_numbers<[1], [0], [0], [1], [0, 0, 1, 1], [], []>} : vector<4x32xf32>, vector<32x4xf32>, vector<4x4xf32> -> vector<4x4xf32>
    %61 = arith.addf %56, %60 : vector<4x4xf32>
    %c36 = arith.constant 36 : index
    %c0_53 = arith.constant 0 : index
    %62 = vector.load %arg8[%c36, %c0_53] : memref<100x32xf32, #tpu.memory_space<vmem>>, vector<4x32xf32>
    %c9 = arith.constant 9 : index
    %c0_54 = arith.constant 0 : index
    %c0_55 = arith.constant 0 : index
    %63 = vector.load %arg5[%c9, %c0_54, %c0_55] : memref<25x32x4xf32, #tpu.memory_space<vmem>>, vector<1x32x4xf32>
    %64 = vector.shape_cast %63 : vector<1x32x4xf32> to vector<32x4xf32>
    %cst_56 = arith.constant dense<0.000000e+00> : vector<4x4xf32>
    %65 = tpu.matmul %62, %64, %cst_56 {dimension_numbers = #tpu.dot_dimension_numbers<[1], [0], [0], [1], [0, 0, 1, 1], [], []>} : vector<4x32xf32>, vector<32x4xf32>, vector<4x4xf32> -> vector<4x4xf32>
    %66 = arith.addf %61, %65 : vector<4x4xf32>
    %c40 = arith.constant 40 : index
    %c0_57 = arith.constant 0 : index
    %67 = vector.load %arg8[%c40, %c0_57] : memref<100x32xf32, #tpu.memory_space<vmem>>, vector<4x32xf32>
    %c10 = arith.constant 10 : index
    %c0_58 = arith.constant 0 : index
    %c0_59 = arith.constant 0 : index
    %68 = vector.load %arg5[%c10, %c0_58, %c0_59] : memref<25x32x4xf32, #tpu.memory_space<vmem>>, vector<1x32x4xf32>
    %69 = vector.shape_cast %68 : vector<1x32x4xf32> to vector<32x4xf32>
    %cst_60 = arith.constant dense<0.000000e+00> : vector<4x4xf32>
    %70 = tpu.matmul %67, %69, %cst_60 {dimension_numbers = #tpu.dot_dimension_numbers<[1], [0], [0], [1], [0, 0, 1, 1], [], []>} : vector<4x32xf32>, vector<32x4xf32>, vector<4x4xf32> -> vector<4x4xf32>
    %71 = arith.addf %66, %70 : vector<4x4xf32>
    %c44 = arith.constant 44 : index
    %c0_61 = arith.constant 0 : index
    %72 = vector.load %arg8[%c44, %c0_61] : memref<100x32xf32, #tpu.memory_space<vmem>>, vector<4x32xf32>
    %c11 = arith.constant 11 : index
    %c0_62 = arith.constant 0 : index
    %c0_63 = arith.constant 0 : index
    %73 = vector.load %arg5[%c11, %c0_62, %c0_63] : memref<25x32x4xf32, #tpu.memory_space<vmem>>, vector<1x32x4xf32>
    %74 = vector.shape_cast %73 : vector<1x32x4xf32> to vector<32x4xf32>
    %cst_64 = arith.constant dense<0.000000e+00> : vector<4x4xf32>
    %75 = tpu.matmul %72, %74, %cst_64 {dimension_numbers = #tpu.dot_dimension_numbers<[1], [0], [0], [1], [0, 0, 1, 1], [], []>} : vector<4x32xf32>, vector<32x4xf32>, vector<4x4xf32> -> vector<4x4xf32>
    %76 = arith.addf %71, %75 : vector<4x4xf32>
    %c48 = arith.constant 48 : index
    %c0_65 = arith.constant 0 : index
    %77 = vector.load %arg8[%c48, %c0_65] : memref<100x32xf32, #tpu.memory_space<vmem>>, vector<4x32xf32>
    %c12_66 = arith.constant 12 : index
    %c0_67 = arith.constant 0 : index
    %c0_68 = arith.constant 0 : index
    %78 = vector.load %arg5[%c12_66, %c0_67, %c0_68] : memref<25x32x4xf32, #tpu.memory_space<vmem>>, vector<1x32x4xf32>
    %79 = vector.shape_cast %78 : vector<1x32x4xf32> to vector<32x4xf32>
    %cst_69 = arith.constant dense<0.000000e+00> : vector<4x4xf32>
    %80 = tpu.matmul %77, %79, %cst_69 {dimension_numbers = #tpu.dot_dimension_numbers<[1], [0], [0], [1], [0, 0, 1, 1], [], []>} : vector<4x32xf32>, vector<32x4xf32>, vector<4x4xf32> -> vector<4x4xf32>
    %81 = arith.addf %76, %80 : vector<4x4xf32>
    %c52 = arith.constant 52 : index
    %c0_70 = arith.constant 0 : index
    %82 = vector.load %arg8[%c52, %c0_70] : memref<100x32xf32, #tpu.memory_space<vmem>>, vector<4x32xf32>
    %c13 = arith.constant 13 : index
    %c0_71 = arith.constant 0 : index
    %c0_72 = arith.constant 0 : index
    %83 = vector.load %arg5[%c13, %c0_71, %c0_72] : memref<25x32x4xf32, #tpu.memory_space<vmem>>, vector<1x32x4xf32>
    %84 = vector.shape_cast %83 : vector<1x32x4xf32> to vector<32x4xf32>
    %cst_73 = arith.constant dense<0.000000e+00> : vector<4x4xf32>
    %85 = tpu.matmul %82, %84, %cst_73 {dimension_numbers = #tpu.dot_dimension_numbers<[1], [0], [0], [1], [0, 0, 1, 1], [], []>} : vector<4x32xf32>, vector<32x4xf32>, vector<4x4xf32> -> vector<4x4xf32>
    %86 = arith.addf %81, %85 : vector<4x4xf32>
    %c56 = arith.constant 56 : index
    %c0_74 = arith.constant 0 : index
    %87 = vector.load %arg8[%c56, %c0_74] : memref<100x32xf32, #tpu.memory_space<vmem>>, vector<4x32xf32>
    %c14 = arith.constant 14 : index
    %c0_75 = arith.constant 0 : index
    %c0_76 = arith.constant 0 : index
    %88 = vector.load %arg5[%c14, %c0_75, %c0_76] : memref<25x32x4xf32, #tpu.memory_space<vmem>>, vector<1x32x4xf32>
    %89 = vector.shape_cast %88 : vector<1x32x4xf32> to vector<32x4xf32>
    %cst_77 = arith.constant dense<0.000000e+00> : vector<4x4xf32>
    %90 = tpu.matmul %87, %89, %cst_77 {dimension_numbers = #tpu.dot_dimension_numbers<[1], [0], [0], [1], [0, 0, 1, 1], [], []>} : vector<4x32xf32>, vector<32x4xf32>, vector<4x4xf32> -> vector<4x4xf32>
    %91 = arith.addf %86, %90 : vector<4x4xf32>
    %c60 = arith.constant 60 : index
    %c0_78 = arith.constant 0 : index
    %92 = vector.load %arg8[%c60, %c0_78] : memref<100x32xf32, #tpu.memory_space<vmem>>, vector<4x32xf32>
    %c15 = arith.constant 15 : index
    %c0_79 = arith.constant 0 : index
    %c0_80 = arith.constant 0 : index
    %93 = vector.load %arg5[%c15, %c0_79, %c0_80] : memref<25x32x4xf32, #tpu.memory_space<vmem>>, vector<1x32x4xf32>
    %94 = vector.shape_cast %93 : vector<1x32x4xf32> to vector<32x4xf32>
    %cst_81 = arith.constant dense<0.000000e+00> : vector<4x4xf32>
    %95 = tpu.matmul %92, %94, %cst_81 {dimension_numbers = #tpu.dot_dimension_numbers<[1], [0], [0], [1], [0, 0, 1, 1], [], []>} : vector<4x32xf32>, vector<32x4xf32>, vector<4x4xf32> -> vector<4x4xf32>
    %96 = arith.addf %91, %95 : vector<4x4xf32>
    %c64 = arith.constant 64 : index
    %c0_82 = arith.constant 0 : index
    %97 = vector.load %arg8[%c64, %c0_82] : memref<100x32xf32, #tpu.memory_space<vmem>>, vector<4x32xf32>
    %c16_83 = arith.constant 16 : index
    %c0_84 = arith.constant 0 : index
    %c0_85 = arith.constant 0 : index
    %98 = vector.load %arg5[%c16_83, %c0_84, %c0_85] : memref<25x32x4xf32, #tpu.memory_space<vmem>>, vector<1x32x4xf32>
    %99 = vector.shape_cast %98 : vector<1x32x4xf32> to vector<32x4xf32>
    %cst_86 = arith.constant dense<0.000000e+00> : vector<4x4xf32>
    %100 = tpu.matmul %97, %99, %cst_86 {dimension_numbers = #tpu.dot_dimension_numbers<[1], [0], [0], [1], [0, 0, 1, 1], [], []>} : vector<4x32xf32>, vector<32x4xf32>, vector<4x4xf32> -> vector<4x4xf32>
    %101 = arith.addf %96, %100 : vector<4x4xf32>
    %c68 = arith.constant 68 : index
    %c0_87 = arith.constant 0 : index
    %102 = vector.load %arg8[%c68, %c0_87] : memref<100x32xf32, #tpu.memory_space<vmem>>, vector<4x32xf32>
    %c17 = arith.constant 17 : index
    %c0_88 = arith.constant 0 : index
    %c0_89 = arith.constant 0 : index
    %103 = vector.load %arg5[%c17, %c0_88, %c0_89] : memref<25x32x4xf32, #tpu.memory_space<vmem>>, vector<1x32x4xf32>
    %104 = vector.shape_cast %103 : vector<1x32x4xf32> to vector<32x4xf32>
    %cst_90 = arith.constant dense<0.000000e+00> : vector<4x4xf32>
    %105 = tpu.matmul %102, %104, %cst_90 {dimension_numbers = #tpu.dot_dimension_numbers<[1], [0], [0], [1], [0, 0, 1, 1], [], []>} : vector<4x32xf32>, vector<32x4xf32>, vector<4x4xf32> -> vector<4x4xf32>
    %106 = arith.addf %101, %105 : vector<4x4xf32>
    %c72 = arith.constant 72 : index
    %c0_91 = arith.constant 0 : index
    %107 = vector.load %arg8[%c72, %c0_91] : memref<100x32xf32, #tpu.memory_space<vmem>>, vector<4x32xf32>
    %c18 = arith.constant 18 : index
    %c0_92 = arith.constant 0 : index
    %c0_93 = arith.constant 0 : index
    %108 = vector.load %arg5[%c18, %c0_92, %c0_93] : memref<25x32x4xf32, #tpu.memory_space<vmem>>, vector<1x32x4xf32>
    %109 = vector.shape_cast %108 : vector<1x32x4xf32> to vector<32x4xf32>
    %cst_94 = arith.constant dense<0.000000e+00> : vector<4x4xf32>
    %110 = tpu.matmul %107, %109, %cst_94 {dimension_numbers = #tpu.dot_dimension_numbers<[1], [0], [0], [1], [0, 0, 1, 1], [], []>} : vector<4x32xf32>, vector<32x4xf32>, vector<4x4xf32> -> vector<4x4xf32>
    %111 = arith.addf %106, %110 : vector<4x4xf32>
    %c76 = arith.constant 76 : index
    %c0_95 = arith.constant 0 : index
    %112 = vector.load %arg8[%c76, %c0_95] : memref<100x32xf32, #tpu.memory_space<vmem>>, vector<4x32xf32>
    %c19 = arith.constant 19 : index
    %c0_96 = arith.constant 0 : index
    %c0_97 = arith.constant 0 : index
    %113 = vector.load %arg5[%c19, %c0_96, %c0_97] : memref<25x32x4xf32, #tpu.memory_space<vmem>>, vector<1x32x4xf32>
    %114 = vector.shape_cast %113 : vector<1x32x4xf32> to vector<32x4xf32>
    %cst_98 = arith.constant dense<0.000000e+00> : vector<4x4xf32>
    %115 = tpu.matmul %112, %114, %cst_98 {dimension_numbers = #tpu.dot_dimension_numbers<[1], [0], [0], [1], [0, 0, 1, 1], [], []>} : vector<4x32xf32>, vector<32x4xf32>, vector<4x4xf32> -> vector<4x4xf32>
    %116 = arith.addf %111, %115 : vector<4x4xf32>
    %c80 = arith.constant 80 : index
    %c0_99 = arith.constant 0 : index
    %117 = vector.load %arg8[%c80, %c0_99] : memref<100x32xf32, #tpu.memory_space<vmem>>, vector<4x32xf32>
    %c20_100 = arith.constant 20 : index
    %c0_101 = arith.constant 0 : index
    %c0_102 = arith.constant 0 : index
    %118 = vector.load %arg5[%c20_100, %c0_101, %c0_102] : memref<25x32x4xf32, #tpu.memory_space<vmem>>, vector<1x32x4xf32>
    %119 = vector.shape_cast %118 : vector<1x32x4xf32> to vector<32x4xf32>
    %cst_103 = arith.constant dense<0.000000e+00> : vector<4x4xf32>
    %120 = tpu.matmul %117, %119, %cst_103 {dimension_numbers = #tpu.dot_dimension_numbers<[1], [0], [0], [1], [0, 0, 1, 1], [], []>} : vector<4x32xf32>, vector<32x4xf32>, vector<4x4xf32> -> vector<4x4xf32>
    %121 = arith.addf %116, %120 : vector<4x4xf32>
    %c84 = arith.constant 84 : index
    %c0_104 = arith.constant 0 : index
    %122 = vector.load %arg8[%c84, %c0_104] : memref<100x32xf32, #tpu.memory_space<vmem>>, vector<4x32xf32>
    %c21 = arith.constant 21 : index
    %c0_105 = arith.constant 0 : index
    %c0_106 = arith.constant 0 : index
    %123 = vector.load %arg5[%c21, %c0_105, %c0_106] : memref<25x32x4xf32, #tpu.memory_space<vmem>>, vector<1x32x4xf32>
    %124 = vector.shape_cast %123 : vector<1x32x4xf32> to vector<32x4xf32>
    %cst_107 = arith.constant dense<0.000000e+00> : vector<4x4xf32>
    %125 = tpu.matmul %122, %124, %cst_107 {dimension_numbers = #tpu.dot_dimension_numbers<[1], [0], [0], [1], [0, 0, 1, 1], [], []>} : vector<4x32xf32>, vector<32x4xf32>, vector<4x4xf32> -> vector<4x4xf32>
    %126 = arith.addf %121, %125 : vector<4x4xf32>
    %c88 = arith.constant 88 : index
    %c0_108 = arith.constant 0 : index
    %127 = vector.load %arg8[%c88, %c0_108] : memref<100x32xf32, #tpu.memory_space<vmem>>, vector<4x32xf32>
    %c22 = arith.constant 22 : index
    %c0_109 = arith.constant 0 : index
    %c0_110 = arith.constant 0 : index
    %128 = vector.load %arg5[%c22, %c0_109, %c0_110] : memref<25x32x4xf32, #tpu.memory_space<vmem>>, vector<1x32x4xf32>
    %129 = vector.shape_cast %128 : vector<1x32x4xf32> to vector<32x4xf32>
    %cst_111 = arith.constant dense<0.000000e+00> : vector<4x4xf32>
    %130 = tpu.matmul %127, %129, %cst_111 {dimension_numbers = #tpu.dot_dimension_numbers<[1], [0], [0], [1], [0, 0, 1, 1], [], []>} : vector<4x32xf32>, vector<32x4xf32>, vector<4x4xf32> -> vector<4x4xf32>
    %131 = arith.addf %126, %130 : vector<4x4xf32>
    %c92 = arith.constant 92 : index
    %c0_112 = arith.constant 0 : index
    %132 = vector.load %arg8[%c92, %c0_112] : memref<100x32xf32, #tpu.memory_space<vmem>>, vector<4x32xf32>
    %c23 = arith.constant 23 : index
    %c0_113 = arith.constant 0 : index
    %c0_114 = arith.constant 0 : index
    %133 = vector.load %arg5[%c23, %c0_113, %c0_114] : memref<25x32x4xf32, #tpu.memory_space<vmem>>, vector<1x32x4xf32>
    %134 = vector.shape_cast %133 : vector<1x32x4xf32> to vector<32x4xf32>
    %cst_115 = arith.constant dense<0.000000e+00> : vector<4x4xf32>
    %135 = tpu.matmul %132, %134, %cst_115 {dimension_numbers = #tpu.dot_dimension_numbers<[1], [0], [0], [1], [0, 0, 1, 1], [], []>} : vector<4x32xf32>, vector<32x4xf32>, vector<4x4xf32> -> vector<4x4xf32>
    %136 = arith.addf %131, %135 : vector<4x4xf32>
    %c96 = arith.constant 96 : index
    %c0_116 = arith.constant 0 : index
    %137 = vector.load %arg8[%c96, %c0_116] : memref<100x32xf32, #tpu.memory_space<vmem>>, vector<4x32xf32>
    %c24_117 = arith.constant 24 : index
    %c0_118 = arith.constant 0 : index
    %c0_119 = arith.constant 0 : index
    %138 = vector.load %arg5[%c24_117, %c0_118, %c0_119] : memref<25x32x4xf32, #tpu.memory_space<vmem>>, vector<1x32x4xf32>
    %139 = vector.shape_cast %138 : vector<1x32x4xf32> to vector<32x4xf32>
    %cst_120 = arith.constant dense<0.000000e+00> : vector<4x4xf32>
    %140 = tpu.matmul %137, %139, %cst_120 {dimension_numbers = #tpu.dot_dimension_numbers<[1], [0], [0], [1], [0, 0, 1, 1], [], []>} : vector<4x32xf32>, vector<32x4xf32>, vector<4x4xf32> -> vector<4x4xf32>
    %141 = arith.addf %136, %140 : vector<4x4xf32>
    %c0_121 = arith.constant 0 : index
    %c0_122 = arith.constant 0 : index
    %142 = vector.load %arg6[%c0_121, %c0_122] : memref<1x4xf32, #tpu.memory_space<vmem>>, vector<1x4xf32>
    %143 = vector.broadcast %142 : vector<1x4xf32> to vector<4x4xf32>
    %144 = arith.addf %141, %143 : vector<4x4xf32>
    %cst_123 = arith.constant 5.000000e-01 : f32
    %145 = vector.broadcast %cst_123 : f32 to vector<4x4xf32>
    %146 = arith.mulf %145, %144 : vector<4x4xf32>
    %147 = math.tanh %146 : vector<4x4xf32>
    %cst_124 = arith.constant 5.000000e-01 : f32
    %148 = vector.broadcast %cst_124 : f32 to vector<4x4xf32>
    %149 = arith.mulf %148, %147 : vector<4x4xf32>
    %cst_125 = arith.constant 5.000000e-01 : f32
    %150 = vector.broadcast %cst_125 : f32 to vector<4x4xf32>
    %151 = arith.addf %149, %150 : vector<4x4xf32>
    %c0_126 = arith.constant 0 : index
    %c0_127 = arith.constant 0 : index
    %c0_128 = arith.constant 0 : index
    %152 = vector.load %arg7[%c0_126, %c0_127, %c0_128] : memref<1x4x4xf32, #tpu.memory_space<vmem>>, vector<1x4x4xf32>
    %153 = vector.shape_cast %152 : vector<1x4x4xf32> to vector<4x4xf32>
    %154 = vector.shape_cast %151 : vector<4x4xf32> to vector<1x4x4xf32>
    tpu.vector_store %arg7[%c0_126, %c0_127, %c0_128], %154 {strides = array<i32>} : memref<1x4x4xf32, #tpu.memory_space<vmem>>, vector<1x4x4xf32>,
    return
  }
  func.func @transform_0(%arg0: i32) -> (i32, i32, i32) {
    %c0_i32 = arith.constant 0 : i32
    %c0_i32_0 = arith.constant 0 : i32
    %c0_i32_1 = arith.constant 0 : i32
    return %arg0, %c0_i32, %c0_i32_0 : i32, i32, i32
  }
  func.func @transform_1(%arg0: i32) -> (i32, i32) {
    %c0_i32 = arith.constant 0 : i32
    %c0_i32_0 = arith.constant 0 : i32
    %c0_i32_1 = arith.constant 0 : i32
    return %c0_i32, %c0_i32_0 : i32, i32
  }
  func.func @transform_2(%arg0: i32) -> (i32, i32) {
    %c0_i32 = arith.constant 0 : i32
    %c0_i32_0 = arith.constant 0 : i32
    %c0_i32_1 = arith.constant 0 : i32
    return %c0_i32, %c0_i32_0 : i32, i32
  }
  func.func @transform_3(%arg0: i32) -> (i32, i32) {
    %c0_i32 = arith.constant 0 : i32
    %c0_i32_0 = arith.constant 0 : i32
    %c0_i32_1 = arith.constant 0 : i32
    return %c0_i32, %c0_i32_0 : i32, i32
  }
  func.func @transform_4(%arg0: i32) -> (i32, i32, i32) {
    %c0_i32 = arith.constant 0 : i32
    %c0_i32_0 = arith.constant 0 : i32
    %c0_i32_1 = arith.constant 0 : i32
    %c0_i32_2 = arith.constant 0 : i32
    return %c0_i32, %c0_i32_0, %c0_i32_1 : i32, i32, i32
  }
  func.func @transform_5(%arg0: i32) -> (i32, i32) {
    %c0_i32 = arith.constant 0 : i32
    %c0_i32_0 = arith.constant 0 : i32
    %c0_i32_1 = arith.constant 0 : i32
    return %c0_i32, %c0_i32_0 : i32, i32
  }
  func.func @transform_6(%arg0: i32) -> (i32, i32, i32) {
    %c0_i32 = arith.constant 0 : i32
    %c0_i32_0 = arith.constant 0 : i32
    %c0_i32_1 = arith.constant 0 : i32
    return %arg0, %c0_i32, %c0_i32_0 : i32, i32, i32
  }
}

</mosaic_0001>

<bundles_post_ra>
// kernel: encoder_cnn_medium_forward.1
= control target key start
LH: loop header
LB: loop body
LE: loop exit
PB: predicated region body
PF: predicated region fallthrough
CT: control target
= control target key end

     0   :  { %11 = vsyncpa [#allocation4], 0  ;;  %s4129_s0 = inlined_call_operand.vmem [shape: f32[2,100,243], index: 0, kind: input, shape index: {}]   ;;  %s4130_s1 = inlined_call_operand.vmem [shape: f32[243,32], index: 1, kind: input, shape index: {}]   ;;  %s4131_s2 = inlined_call_operand.vmem [shape: f32[1,32], index: 2, kind: input, shape index: {}]   ;;  %s4132_s3 = inlined_call_operand.vmem [shape: f32[1,32], index: 3, kind: input, shape index: {}]   ;;  %s4133_s4 = inlined_call_operand.vmem [shape: f32[25,32,4], index: 4, kind: input, shape index: {}]   ;;  %s4134_s5 = inlined_call_operand.vmem [shape: f32[1,4], index: 5, kind: input, shape index: {}]   ;;  %s4135_s6 = inlined_call_operand.hbm [shape: f32[2,4,4], index: 6, kind: output, shape index: {}]  }
   0x1   :  { %13 = vsyncpa [#allocation4 + $0x1], 0  ;;  %s3351_s21 = smov 0   ;;  %s3353_s22 = smov 0  }
   0x2   :  { %s3355_s23 = smov 0   ;;  %s3357_s24 = smov 0  }
   0x3 LB: > { %s3372_s25 = sadd.s32 4294967295, %s3311_s24   ;;  %s2659_s26 = sadd.s32 4294967294, %s3311_s24   ;;  %s3311_s24 = sphi %s3357_s24, %s4141_s24   ;;  %s3307_s23 = sphi %s3355_s23, %s4140_s23   ;;  %s3303_s22 = sphi %s3353_s22, %s4139_s22   ;;  %s3299_s21 = sphi %s3351_s21, %s4138_s21  }
   0x4   : > { %s3376_s27 = sadd.s32 1, %s3311_s24   ;;  %s157_s28 = sadd.s32 1, %s3307_s23 }
   0x5   : > { %s154_s29 = ssub.s32 %s3311_s24, %s3376_s27  ;;  %p167_p0 = scmp.ne.s32.totalorder %s3307_s23, %s3303_s22 }
   0x6   : > { %p155_p1 = scmp.eq.s32.totalorder %s154_s29, 0  ;;  %p168_p2 = scmp.eq.s32.totalorder %s3372_s25, 1 }
   0x7   : > { %p173_p3 = scmp.ne.s32.totalorder %s3303_s22, %s3299_s21  ;;  %p174_p4 = scmp.eq.s32.totalorder %s2659_s26, 1 }
   0x8   : > { %s3387_s30 = scalar_select %p155_p1, %s3307_s23, %s157_s28  }
   0x9   : > { %p3389_p5 = por %p168_p2, %p167_p0  ;;  %p3393_p6 = por %p174_p4, %p173_p3 }
   0xa   : > { %p2662_p7 = scmp.ge.s32.totalorder %s3311_s24, 1  ;;  %p215_p8 = scmp.lt.s32.totalorder %s3311_s24, 3 }
   0xc   : > { %p216_p9 = pnand %p2662_p7, %p215_p8 }
   0xd   : > { %p245_p10 = scmp.lt.s32.totalorder (!%p216_p9), %s3372_s25, 1  ;;  %s242_s15 = sand.u32 (!%p216_p9), 1, %s3303_s22  }
   0xe   : > { %219 = sbr.rel (%p216_p9) target bundleno = 666 (0x29a), region = 44  ;;  %s2804_s17 = sshll.u32 (!%p216_p9), %s3372_s25, 6 }
   0xf   : > { %s2598_s28 = scalar_lea.hbm (!%p216_p9), %s4135_s6, %s2804_s17  ;;  %s2587_s9 = scalar_lea.sflag (!%p216_p9), [#allocation4], %s242_s15 }
  0x13   : > { %v291_v0 = vld [vmem:[%s4130_s1 + $0x78] sm:$0xff]  ;;  %v3313_v1 = vmov 0.0   ;;  %v290_v2 = vld [vmem:[%s4130_s1 + $0x70] sm:$0xff]  ;;  %s246_s13 = scalar_select %p245_p10, %s3372_s25, 1  ;;  %v289_v3 = vld [vmem:[%s4130_s1 + $0x68] sm:$0xff]  ;;  %vm307_vm0 = vcmask 941056  }
  0x14   : > { %351 = vmatprep.subr.mxu0 %v3313_v1  ;;  %2932 = vmatprep.subr.mxu1 %v3313_v1  ;;  %v288_v4 = vld [vmem:[%s4130_s1 + $0x60] sm:$0xff]  ;;  %v287_v5 = vld [vmem:[%s4130_s1 + $0x58] sm:$0xff]  ;;  %v286_v6 = vld [vmem:[%s4130_s1 + $0x50] sm:$0xff]  ;;  %vm347_vm1 = vcmask 1042432   ;;  %vm3314_vm2 = vmmov 0   ;;  %vm560_vm4 = vcmask 261120  }
  0x15   : > { %352 = vmatpush1.msra.mxu0 %v291_v0  ;;  %s3207_s16 = smul.u32 208, %s246_s13  ;;  %v285_v8 = vld [vmem:[%s4130_s1 + $0x48] sm:$0xff]  ;;  %v284_v9 = vld [vmem:[%s4130_s1 + $0x40] sm:$0xff]  ;;  %v283_v10 = vld [vmem:[%s4130_s1 + $0x38] sm:$0xff]  ;;  %2940 = vmatprep.mubr.msk.f32.mxu1 %vm3314_vm2, %v3313_v1 }
  0x16   : > { %353 = vmatprep.subr.mxu0 %v3313_v1  ;;  %v282_v11 = vld [vmem:[%s4130_s1 + $0x30] sm:$0xff]  ;;  %v281_v12 = vld [vmem:[%s4130_s1 + $0x28] sm:$0xff]  ;;  %v280_v13 = vld [vmem:[%s4130_s1 + $0x20] sm:$0xff] }
  0x17   : > { %354 = vmatpush1.msra.mxu0 %v290_v2  ;;  %s3424_s29 = scalar_lea.vmem %s4129_s0, %s3207_s16  ;;  %v279_v14 = vld [vmem:[%s4130_s1 + $0x18] sm:$0xff]  ;;  %v278_v15 = vld [vmem:[%s4130_s1 + $0x10] sm:$0xff]  ;;  %v277_v16 = vld [vmem:[%s4130_s1 + $0x8] sm:$0xff]  ;;  %s2663_s16 = sshll.u32 %s242_s15, 2 }
  0x18   : > { %355 = vmatprep.subr.mxu0 %v3313_v1  ;;  %v251_v7 = vld [vmem:[%s3424_s29 + $0x8] sm:$0xff]  ;;  %v276_v17 = vld [vmem:[%s4130_s1] sm:$0xff]  ;;  %v306_v18 = vld [vmem:[%s4130_s1 + $0xf0] sm:$0x7]  ;;  %s244_s18 = scalar_lea.vmem [#allocation3], %s2663_s16 }
  0x19   : > { %356 = vmatpush1.msra.mxu0 %v289_v3  ;;  %2666 = vmatprep.mubr.msk.f32.mxu0 %vm307_vm0, %v251_v7  ;;  %v305_v19 = vld [vmem:[%s4130_s1 + $0xe8] sm:$0xff]  ;;  %v304_v20 = vld [vmem:[%s4130_s1 + $0xe0] sm:$0xff]  ;;  %v303_v21 = vld [vmem:[%s4130_s1 + $0xd8] sm:$0xff]  ;;  %s2600_s19 = sshll.u32 %s244_s18, 4  ;;  %s2601_s19 = int_to_ptr.vmem [resolvable:$true] %s2600_s19 }
  0x1a   : > { %357 = vmatprep.subr.mxu0 %v3313_v1  ;;  %v302_v22 = vld [vmem:[%s4130_s1 + $0xd0] sm:$0xff]  ;;  %v301_v23 = vld [vmem:[%s4130_s1 + $0xc8] sm:$0xff]  ;;  %v300_v24 = vld [vmem:[%s4130_s1 + $0xc0] sm:$0xff]  ;;  %s3251_s10 = scalar_lea.vmem %s2601_s19, 64 }
  0x1b   : > { %358 = vmatpush1.msra.mxu0 %v288_v4  ;;  %v299_v25 = vld [vmem:[%s4130_s1 + $0xb8] sm:$0xff]  ;;  %v298_v26 = vld [vmem:[%s4130_s1 + $0xb0] sm:$0xff]  ;;  %v297_v27 = vld [vmem:[%s4130_s1 + $0xa8] sm:$0xff]  ;;  %p3252_p11 = scmp.ne.s32.totalorder %s2601_s19, %s3251_s10 }
  0x1c   : > { %359 = vmatprep.subr.mxu0 %v3313_v1  ;;  %v296_v28 = vld [vmem:[%s4130_s1 + $0xa0] sm:$0xff]  ;;  %v295_v29 = vld [vmem:[%s4130_s1 + $0x98] sm:$0xff]  ;;  %v294_v30 = vld [vmem:[%s4130_s1 + $0x90] sm:$0xff] }
  0x1d   : > { %360 = vmatpush1.msra.mxu0 %v287_v5  ;;  %v293_v31 = vld [vmem:[%s4130_s1 + $0x88] sm:$0xff]  ;;  %v292_v32 = vld [vmem:[%s4130_s1 + $0x80] sm:$0xff]  ;;  %v253_v34 = vld [vmem:[%s3424_s29 + $0x18] sm:$0xff]  ;;  %p3253_p12 = pnand %p3252_p11, %p3389_p5 }
  0x1e   : > { %361 = vmatprep.subr.mxu0 %v3313_v1  ;;  %v250_v33 = vld [vmem:[%s3424_s29] sm:$0xff]  ;;  %v252_v35 = vld [vmem:[%s3424_s29 + $0x10] sm:$0xff]  ;;  %v255_v36 = vld [vmem:[%s3424_s29 + $0x28] sm:$0xff] }
  0x1f   : > { %362 = vmatpush1.msra.mxu0 %v286_v6  ;;  %v254_v37 = vld [vmem:[%s3424_s29 + $0x20] sm:$0xff]  ;;  %v257_v38 = vld [vmem:[%s3424_s29 + $0x38] sm:$0xff]  ;;  %v256_v39 = vld [vmem:[%s3424_s29 + $0x30] sm:$0xff]  ;;  %p3254_p13 = pneg %p3253_p12 }
  0x20   : > { %363 = vmatprep.subr.mxu0 %v3313_v1  ;;  %v259_v40 = vld [vmem:[%s3424_s29 + $0x48] sm:$0xff]  ;;  %v258_v41 = vld [vmem:[%s3424_s29 + $0x40] sm:$0xff]  ;;  %v261_v42 = vld [vmem:[%s3424_s29 + $0x58] sm:$0xff] }
  0x21   : > { %364 = vmatpush1.msra.mxu0 %v285_v8  ;;  %v260_v43 = vld [vmem:[%s3424_s29 + $0x50] sm:$0xff]  ;;  %v263_v44 = vld [vmem:[%s3424_s29 + $0x68] sm:$0xff]  ;;  %v262_v45 = vld [vmem:[%s3424_s29 + $0x60] sm:$0xff] }
  0x22   : > { %365 = vmatprep.subr.mxu0 %v3313_v1  ;;  %v265_v46 = vld [vmem:[%s3424_s29 + $0x78] sm:$0xff]  ;;  %v264_v47 = vld [vmem:[%s3424_s29 + $0x70] sm:$0xff]  ;;  %v267_v48 = vld [vmem:[%s3424_s29 + $0x88] sm:$0xff] }
  0x23   : > { %366 = vmatpush1.msra.mxu0 %v284_v9  ;;  %v266_v49 = vld [vmem:[%s3424_s29 + $0x80] sm:$0xff]  ;;  %v269_v50 = vld [vmem:[%s3424_s29 + $0x98] sm:$0xff]  ;;  %v268_v51 = vld [vmem:[%s3424_s29 + $0x90] sm:$0xff] }
  0x24   : > { %367 = vmatprep.subr.mxu0 %v3313_v1  ;;  %v271_v52 = vld [vmem:[%s3424_s29 + $0xa8] sm:$0xff]  ;;  %v270_v53 = vld [vmem:[%s3424_s29 + $0xa0] sm:$0xff]  ;;  %v273_v54 = vld [vmem:[%s3424_s29 + $0xb8] sm:$0xff] }
  0x25   : > { %368 = vmatpush1.msra.mxu0 %v283_v10  ;;  %v272_v55 = vld [vmem:[%s3424_s29 + $0xb0] sm:$0xff]  ;;  %v275_v56 = vld [vmem:[%s3424_s29 + $0xc8] sm:$0xf]  ;;  %v274_v57 = vld [vmem:[%s3424_s29 + $0xc0] sm:$0xf]  ;;  %s3315_s29 = smov [#allocation3]  }
  0x26   : > { %369 = vmatprep.subr.mxu0 %v3313_v1  ;;  %v2684_v58 = vld [vmem:[%s4133_s4 + $0x38] sm:$0xff]  ;;  %v2683_v59 = vld [vmem:[%s4133_s4 + $0x30] sm:$0xff]  ;;  %v2682_v60 = vld [vmem:[%s4133_s4 + $0x28] sm:$0xff]  ;;  %s3255_s11 = sshll.u32 %s3315_s29, 4  ;;  %s3256_s11 = int_to_ptr.vmem [resolvable:$false] %s3255_s11 }
  0x27   : > { %370 = vmatpush1.msra.mxu0 %v282_v11  ;;  %2933 = vmatpush3.msra.mxu1 %v2684_v58  ;;  %v2681_v61 = vld [vmem:[%s4133_s4 + $0x20] sm:$0xff]  ;;  %v2750_v62 = vld [vmem:[%s4133_s4 + $0x1d8] sm:$0xff]  ;;  %v2749_v63 = vld [vmem:[%s4133_s4 + $0x1d0] sm:$0xff]  ;;  %s3257_s25 = scalar_lea.vmem %s3256_s11, 128  ;;  %p3258_p0 = scmp.lt.s32.totalorder %s2601_s19, %s3256_s11 }
  0x28   : > { %371 = vmatprep.subr.mxu0 %v3313_v1  ;;  %2934 = vmatprep.subr.mxu1 %v3313_v1  ;;  %v2748_v0 = vld [vmem:[%s4133_s4 + $0x1c8] sm:$0xff]  ;;  %v2747_v2 = vld [vmem:[%s4133_s4 + $0x1c0] sm:$0xff]  ;;  %p3259_p1 = scmp.lt.s32.totalorder %s3257_s25, %s3251_s10 }
  0x29   : > { %372 = vmatpush1.msra.mxu0 %v281_v12  ;;  %2935 = vmatpush3.msra.mxu1 %v2683_v59  ;;  %v3610_v3 = vld [vmem:[%s4131_s2] ss:$0 sm:$0xff]  ;;  %v2695_v59 = vld [vmem:[%s4133_s4 + $0x78] sm:$0xff] }
  0x2a   : > { %373 = vmatprep.subr.mxu0 %v3313_v1  ;;  %2936 = vmatprep.subr.mxu1 %v3313_v1  ;;  %v3615_v5 = vld [vmem:[%s4132_s3] ss:$0 sm:$0xff]  ;;  %p3260_p2 = por %p3259_p1, %p3258_p0 }
  0x2b   : > { %374 = vmatpush1.msra.mxu0 %v280_v13  ;;  %2937 = vmatpush3.msra.mxu1 %v2682_v60 }
  0x2c   : > { %375 = vmatprep.subr.mxu0 %v3313_v1  ;;  %2938 = vmatprep.subr.mxu1 %v3313_v1  ;;  %p3261_p3 = pnand %p3260_p2, %p3254_p13 }
  0x2d   : > { %376 = vmatpush1.msra.mxu0 %v279_v14  ;;  %2939 = vmatpush3.msra.mxu1 %v2681_v61 }
  0x2e   : > { %377 = vmatprep.subr.mxu0 %v3313_v1  ;;  %2943 = vmatprep.subr.mxu1 %v3313_v1 }
  0x2f   : > { %378 = vmatpush1.msra.mxu0 %v278_v15 }
  0x30   : > { %379 = vmatprep.subr.mxu0 %v3313_v1 }
  0x31   : > { %380 = vmatpush1.msra.mxu0 %v277_v16 }
  0x32   : > { %381 = vmatprep.subr.mxu0 %v3313_v1 }
  0x33   : > { %382 = vmatpush1.msra.mxu0 %v276_v17 }
  0x34   : > { %385 = vmatprep.subr.mxu0 %v3313_v1 }
  0x35   : > { %2665 = vmatpush2.msk.msra.mxu0 %vm347_vm1, %v306_v18  ;;  %vm573_vm1 = vcmask 257024  }
  0x36   : > { %387 = vmatprep.subr.mxu0 %v3313_v1 }
  0x37   : > { %388 = vmatpush2.msra.mxu0 %v305_v19 }
  0x38   : > { %389 = vmatprep.subr.mxu0 %v3313_v1 }
  0x39   : > { %390 = vmatpush2.msra.mxu0 %v304_v20 }
  0x3a   : > { %391 = vmatprep.subr.mxu0 %v3313_v1 }
  0x3b   : > { %392 = vmatpush2.msra.mxu0 %v303_v21 }
  0x3c   : > { %393 = vmatprep.subr.mxu0 %v3313_v1 }
  0x3d   : > { %394 = vmatpush2.msra.mxu0 %v302_v22 }
  0x3e   : > { %395 = vmatprep.subr.mxu0 %v3313_v1 }
  0x3f   : > { %396 = vmatpush2.msra.mxu0 %v301_v23 }
  0x40   : > { %397 = vmatprep.subr.mxu0 %v3313_v1 }
  0x41   : > { %398 = vmatpush2.msra.mxu0 %v300_v24  ;;  %v579_v24 = vld [vmem:[%s4133_s4 + $0x18] sm:$0xff] }
  0x42   : > { %399 = vmatprep.subr.mxu0 %v3313_v1 }
  0x43   : > { %400 = vmatpush2.msra.mxu0 %v299_v25 }
  0x44   : > { %401 = vmatprep.subr.mxu0 %v3313_v1 }
  0x45   : > { %402 = vmatpush2.msra.mxu0 %v298_v26 }
  0x46   : > { %403 = vmatprep.subr.mxu0 %v3313_v1 }
  0x47   : > { %404 = vmatpush2.msra.mxu0 %v297_v27 }
  0x48   : > { %405 = vmatprep.subr.mxu0 %v3313_v1 }
  0x49   : > { %406 = vmatpush2.msra.mxu0 %v296_v28 }
  0x4a   : > { %407 = vmatprep.subr.mxu0 %v3313_v1 }
  0x4b   : > { %408 = vmatpush2.msra.mxu0 %v295_v29  ;;  %v578_v29 = vld [vmem:[%s4133_s4 + $0x10] sm:$0xff] }
  0x4c   : > { %409 = vmatprep.subr.mxu0 %v3313_v1 }
  0x4d   : > { %410 = vmatpush2.msra.mxu0 %v294_v30 }
  0x4e   : > { %411 = vmatprep.subr.mxu0 %v3313_v1 }
  0x4f   : > { %412 = vmatpush2.msra.mxu0 %v293_v31 }
  0x50   : > { %413 = vmatprep.subr.mxu0 %v3313_v1 }
  0x51   : > { %414 = vmatpush2.msra.mxu0 %v292_v32 }
  0x52   : > { %416 = vmatmul.mubr.f32.vlgmr.msra.gmra.mxu0 %v250_v33  ;;  %3086 = vmatprep.subr.mxu0 %v3313_v1  ;;  %v577_v33 = vld [vmem:[%s4133_s4 + $0x8] sm:$0xff] }
  0x53   : > { %2667 = vmatprep.mubr.msk.f32.mxu0 %vm307_vm0, %v253_v34  ;;  %3087 = vmatpush3.msra.mxu0 %v2750_v62 }
  0x54   : > { %3088 = vmatprep.subr.mxu0 %v3313_v1 }
  0x55   : > { %3089 = vmatpush3.msra.mxu0 %v2749_v63  ;;  %v2694_v63 = vld [vmem:[%s4133_s4 + $0x70] sm:$0xff] }
  0x56   : > { %421 = vmatmul.mubr.f32.gmra.mxu0 %v252_v35  ;;  %3090 = vmatprep.subr.mxu0 %v3313_v1 }
  0x57   : > { %2668 = vmatprep.mubr.msk.f32.mxu0 %vm307_vm0, %v255_v36  ;;  %3091 = vmatpush3.msra.mxu0 %v2748_v0 }
  0x58   : > { %3092 = vmatprep.subr.mxu0 %v3313_v1 }
  0x59   : > { %3093 = vmatpush3.msra.mxu0 %v2747_v2 }
  0x5a   : > { %426 = vmatmul.mubr.f32.gmra.mxu0 %v254_v37  ;;  %3108 = vmatprep.subr.mxu0 %v3313_v1  ;;  %v576_v37 = vld [vmem:[%s4133_s4] sm:$0xff] }
  0x5b   : > { %2669 = vmatprep.mubr.msk.f32.mxu0 %vm307_vm0, %v257_v38 }
  0x5e   : > { %431 = vmatmul.mubr.f32.gmra.mxu0 %v256_v39 }
  0x5f   : > { %2670 = vmatprep.mubr.msk.f32.mxu0 %vm307_vm0, %v259_v40 }
  0x62   : > { %436 = vmatmul.mubr.f32.gmra.mxu0 %v258_v41  ;;  %v2690_v41 = vld [vmem:[%s4133_s4 + $0x58] sm:$0xff] }
  0x63   : > { %2671 = vmatprep.mubr.msk.f32.mxu0 %vm307_vm0, %v261_v42 }
  0x66   : > { %441 = vmatmul.mubr.f32.gmra.mxu0 %v260_v43 }
  0x67   : > { %2672 = vmatprep.mubr.msk.f32.mxu0 %vm307_vm0, %v263_v44 }
  0x6a   : > { %446 = vmatmul.mubr.f32.gmra.mxu0 %v262_v45 }
  0x6b   : > { %2673 = vmatprep.mubr.msk.f32.mxu0 %vm307_vm0, %v265_v46  ;;  %v2689_v46 = vld [vmem:[%s4133_s4 + $0x50] sm:$0xff] }
  0x6e   : > { %451 = vmatmul.mubr.f32.gmra.mxu0 %v264_v47 }
  0x6f   : > { %2674 = vmatprep.mubr.msk.f32.mxu0 %vm307_vm0, %v267_v48 }
  0x72   : > { %456 = vmatmul.mubr.f32.gmra.mxu0 %v266_v49 }
  0x73   : > { %2675 = vmatprep.mubr.msk.f32.mxu0 %vm307_vm0, %v269_v50  ;;  %v2688_v50 = vld [vmem:[%s4133_s4 + $0x48] sm:$0xff] }
  0x76   : > { %461 = vmatmul.mubr.f32.gmra.mxu0 %v268_v51 }
  0x77   : > { %2676 = vmatprep.mubr.msk.f32.mxu0 %vm307_vm0, %v271_v52 }
  0x7a   : > { %466 = vmatmul.mubr.f32.gmra.mxu0 %v270_v53 }
  0x7b   : > { %2677 = vmatprep.mubr.msk.f32.mxu0 %vm307_vm0, %v273_v54  ;;  %v2687_v54 = vld [vmem:[%s4133_s4 + $0x40] sm:$0xff] }
  0x7e   : > { %471 = vmatmul.mubr.f32.gmra.mxu0 %v272_v55 }
  0x7f   : > { %2678 = vmatprep.mubr.msk.f32.mxu0 %vm307_vm0, %v275_v56 }
  0x82   : > { %476 = vmatmul.mubr.f32.gmra.mxu0 %v274_v57 }
  0x83   : > { %3094 = vmatprep.mubr.msk.f32.mxu0 %vm3314_vm2, %v3313_v1 }
 0x112   : > { %v417_v4 = vpop.f32.mrf.mxu0 }
 0x113   : > { %v488_v6 = vmul.f32 %v3610_v3, %v417_v4 }
 0x114   : > { %v419_v7 = vpop.f32.mrf.mxu0 }
 0x115   : > { %v508_v8 = vadd.f32 %v3615_v5, %v488_v6  ;;  %v2693_v6 = vld [vmem:[%s4133_s4 + $0x68] sm:$0xff] }
 0x116   : > { %v422_v9 = vpop.f32.mrf.mxu0 }
 0x117   : > { %vm521_vm3 = vcmp.ge.f32.partialorder %v508_v8, 0.0  ;;  %v534_v10 = vmul.f32 0.01, %v508_v8  ;;  %v489_v11 = vmul.f32 %v3610_v3, %v422_v9 }
 0x118   : > { %v424_v12 = vpop.f32.mrf.mxu0 }
 0x119   : > { %v547_v13 = vsel %vm521_vm3, %v508_v8, %v534_v10  ;;  %v509_v14 = vadd.f32 %v3615_v5, %v489_v11  ;;  %v2692_v10 = vld [vmem:[%s4133_s4 + $0x60] sm:$0xff] }
 0x11a   : > { %561 = vst.msk [vmem:[#allocation2] sm:$0xff] %vm560_vm4, %v547_v13  ;;  %v427_v15 = vpop.f32.mrf.mxu0 }
 0x11b   : > { %vm522_vm5 = vcmp.ge.f32.partialorder %v509_v14, 0.0  ;;  %v535_v16 = vmul.f32 0.01, %v509_v14  ;;  %v490_v17 = vmul.f32 %v3610_v3, %v427_v15 }
 0x11c   : > { %v429_v18 = vpop.f32.mrf.mxu0 }
 0x11d   : > { %v548_v19 = vsel %vm522_vm5, %v509_v14, %v535_v16  ;;  %v510_v20 = vadd.f32 %v3615_v5, %v490_v17  ;;  %v2700_v14 = vld [vmem:[%s4133_s4 + $0x98] sm:$0xff] }
 0x11e   : > { %562 = vst.msk [vmem:[#allocation2 + $0x8] sm:$0xff] %vm560_vm4, %v548_v19  ;;  %v432_v21 = vpop.f32.mrf.mxu0  ;;  %v2699_v19 = vld [vmem:[%s4133_s4 + $0x90] sm:$0xff] }
 0x11f   : > { %vm523_vm6 = vcmp.ge.f32.partialorder %v510_v20, 0.0  ;;  %v536_v22 = vmul.f32 0.01, %v510_v20  ;;  %v491_v23 = vmul.f32 %v3610_v3, %v432_v21 }
 0x120   : > { %v434_v25 = vpop.f32.mrf.mxu0 }
 0x121   : > { %v580_v26 = vld [vmem:[#allocation2 + $0x4] sm:$0xf]  ;;  %v549_v27 = vsel %vm523_vm6, %v510_v20, %v536_v22  ;;  %v511_v28 = vadd.f32 %v3615_v5, %v491_v23  ;;  %v575_v43 = vld [vmem:[#allocation2] sm:$0xf]  ;;  %v2698_v23 = vld [vmem:[%s4133_s4 + $0x88] sm:$0xff] }
 0x122   : > { %2941 = vmatmul.mubr.msk.f32.vlgmr.msra.gmra.mxu1 %vm560_vm4, %v580_v26  ;;  %563 = vst.msk [vmem:[#allocation2 + $0x10] sm:$0xff] %vm560_vm4, %v549_v27  ;;  %v437_v30 = vpop.f32.mrf.mxu0 }
 0x123   : > { %2944 = vmatpush3.msra.mxu1 %v579_v24  ;;  %2951 = vmatprep.mubr.msk.f32.mxu1 %vm3314_vm2, %v3313_v1  ;;  %vm524_vm7 = vcmp.ge.f32.partialorder %v511_v28, 0.0  ;;  %v537_v31 = vmul.f32 0.01, %v511_v28  ;;  %v492_v32 = vmul.f32 %v3610_v3, %v437_v30  ;;  %v2760_v24 = vld [vmem:[%s4133_s4 + $0x218] sm:$0xff]  ;;  %v2759_v30 = vld [vmem:[%s4133_s4 + $0x210] sm:$0xff] }
 0x124   : > { %2945 = vmatprep.subr.mxu1 %v3313_v1  ;;  %v439_v34 = vpop.f32.mrf.mxu0 }
 0x125   : > { %2946 = vmatpush3.msra.mxu1 %v578_v29  ;;  %v550_v35 = vsel %vm524_vm7, %v511_v28, %v537_v31  ;;  %v512_v36 = vadd.f32 %v3615_v5, %v492_v32  ;;  %v732_v56 = vld [vmem:[#allocation2 + $0x8] sm:$0xf]  ;;  %v812_v16 = vld [vmem:[#allocation2 + $0xc] sm:$0xf]  ;;  %v2697_v29 = vld [vmem:[%s4133_s4 + $0x80] sm:$0xff] }
 0x126   : > { %2947 = vmatprep.subr.mxu1 %v3313_v1  ;;  %564 = vst.msk [vmem:[#allocation2 + $0x18] sm:$0xff] %vm560_vm4, %v550_v35  ;;  %v442_v38 = vpop.f32.mrf.mxu0  ;;  %v2705_v35 = vld [vmem:[%s4133_s4 + $0xb8] sm:$0xff] }
 0x127   : > { %2948 = vmatpush3.msra.mxu1 %v577_v33  ;;  %vm525_vm8 = vcmp.ge.f32.partialorder %v512_v36, 0.0  ;;  %v538_v39 = vmul.f32 0.01, %v512_v36  ;;  %v493_v40 = vmul.f32 %v3610_v3, %v442_v38 }
 0x128   : > { %2949 = vmatprep.subr.mxu1 %v3313_v1  ;;  %v444_v42 = vpop.f32.mrf.mxu0 }
 0x129   : > { %2950 = vmatpush3.msra.mxu1 %v576_v37  ;;  %v551_v44 = vsel %vm525_vm8, %v512_v36, %v538_v39  ;;  %v513_v45 = vadd.f32 %v3615_v5, %v493_v40  ;;  %v892_v32 = vld [vmem:[#allocation2 + $0x10] sm:$0xf]  ;;  %v2758_v40 = vld [vmem:[%s4133_s4 + $0x208] sm:$0xff] }
 0x12a   : > { %2952 = vmatmul.mubr.msk.f32.vlgmr.msra.gmra.mxu1 %vm560_vm4, %v575_v43  ;;  %2954 = vmatprep.subr.mxu1 %v3313_v1  ;;  %565 = vst.msk [vmem:[#allocation2 + $0x20] sm:$0xff] %vm560_vm4, %v551_v44  ;;  %v447_v47 = vpop.f32.mrf.mxu0  ;;  %v2704_v39 = vld [vmem:[%s4133_s4 + $0xb0] sm:$0xff]  ;;  %v2703_v44 = vld [vmem:[%s4133_s4 + $0xa8] sm:$0xff] }
 0x12b   : > { %2955 = vmatpush3.msra.mxu1 %v2690_v41  ;;  %2962 = vmatprep.mubr.msk.f32.mxu1 %vm3314_vm2, %v3313_v1  ;;  %vm526_vm9 = vcmp.ge.f32.partialorder %v513_v45, 0.0  ;;  %v539_v48 = vmul.f32 0.01, %v513_v45  ;;  %v494_v49 = vmul.f32 %v3610_v3, %v447_v47 }
 0x12c   : > { %2956 = vmatprep.subr.mxu1 %v3313_v1  ;;  %v449_v51 = vpop.f32.mrf.mxu0 }
 0x12d   : > { %2957 = vmatpush3.msra.mxu1 %v2689_v46  ;;  %v552_v52 = vsel %vm526_vm9, %v513_v45, %v539_v48  ;;  %v514_v53 = vadd.f32 %v3615_v5, %v494_v49  ;;  %v2757_v45 = vld [vmem:[%s4133_s4 + $0x200] sm:$0xff] }
 0x12e   : > { %2958 = vmatprep.subr.mxu1 %v3313_v1  ;;  %566 = vst.msk [vmem:[#allocation2 + $0x28] sm:$0xff] %vm560_vm4, %v552_v52  ;;  %v452_v55 = vpop.f32.mrf.mxu0 }
 0x12f   : > { %2959 = vmatpush3.msra.mxu1 %v2688_v50  ;;  %vm527_vm10 = vcmp.ge.f32.partialorder %v514_v53, 0.0  ;;  %v540_v57 = vmul.f32 0.01, %v514_v53  ;;  %v495_v58 = vmul.f32 %v3610_v3, %v452_v55  ;;  %v972_v50 = vld [vmem:[#allocation2 + $0x14] sm:$0xf]  ;;  %v2708_v55 = vld [vmem:[%s4133_s4 + $0xc8] sm:$0xff] }
 0x130   : > { %2960 = vmatprep.subr.mxu1 %v3313_v1  ;;  %v454_v60 = vpop.f32.mrf.mxu0 }
 0x131   : > { %2961 = vmatpush3.msra.mxu1 %v2687_v54  ;;  %v553_v61 = vsel %vm527_vm10, %v514_v53, %v540_v57  ;;  %v515_v62 = vadd.f32 %v3615_v5, %v495_v58  ;;  %v2709_v53 = vld [vmem:[%s4133_s4 + $0xd0] sm:$0xff]  ;;  %v2770_v54 = vld [vmem:[%s4133_s4 + $0x258] sm:$0xff]  ;;  %v2707_v57 = vld [vmem:[%s4133_s4 + $0xc0] sm:$0xff] }
 0x132   : > { %2963 = vmatmul.mubr.msk.f32.vlgmr.msra.gmra.mxu1 %vm560_vm4, %v732_v56  ;;  %2965 = vmatprep.subr.mxu1 %v3313_v1  ;;  %567 = vst.msk [vmem:[#allocation2 + $0x30] sm:$0xff] %vm560_vm4, %v553_v61  ;;  %v457_v0 = vpop.f32.mrf.mxu0  ;;  %v2769_v56 = vld [vmem:[%s4133_s4 + $0x250] sm:$0xff]  ;;  %v2768_v58 = vld [vmem:[%s4133_s4 + $0x248] sm:$0xff]  ;;  %v2715_v60 = vld [vmem:[%s4133_s4 + $0xf8] sm:$0xff] }
 0x133   : > { %2966 = vmatpush3.msra.mxu1 %v2695_v59  ;;  %2973 = vmatprep.mubr.msk.f32.mxu1 %vm3314_vm2, %v3313_v1  ;;  %vm528_vm11 = vcmp.ge.f32.partialorder %v515_v62, 0.0  ;;  %v541_v2 = vmul.f32 0.01, %v515_v62  ;;  %v496_v4 = vmul.f32 %v3610_v3, %v457_v0  ;;  %v1052_v59 = vld [vmem:[#allocation2 + $0x18] sm:$0xf]  ;;  %v2714_v61 = vld [vmem:[%s4133_s4 + $0xf0] sm:$0xff] }
 0x134   : > { %2967 = vmatprep.subr.mxu1 %v3313_v1  ;;  %v459_v7 = vpop.f32.mrf.mxu0 }
 0x135   : > { %2968 = vmatpush3.msra.mxu1 %v2694_v63  ;;  %v554_v8 = vsel %vm528_vm11, %v515_v62, %v541_v2  ;;  %v516_v9 = vadd.f32 %v3615_v5, %v496_v4  ;;  %v2767_v62 = vld [vmem:[%s4133_s4 + $0x240] sm:$0xff]  ;;  %v2713_v63 = vld [vmem:[%s4133_s4 + $0xe8] sm:$0xff]  ;;  %v2780_v4 = vld [vmem:[%s4133_s4 + $0x298] sm:$0xff] }
 0x136   : > { %2969 = vmatprep.subr.mxu1 %v3313_v1  ;;  %568 = vst.msk [vmem:[#allocation2 + $0x38] sm:$0xff] %vm560_vm4, %v554_v8  ;;  %v462_v11 = vpop.f32.mrf.mxu0  ;;  %v2712_v2 = vld [vmem:[%s4133_s4 + $0xe0] sm:$0xff]  ;;  %v1132_v7 = vld [vmem:[#allocation2 + $0x1c] sm:$0xf]  ;;  %v2719_v8 = vld [vmem:[%s4133_s4 + $0x110] sm:$0xff] }
 0x137   : > { %2970 = vmatpush3.msra.mxu1 %v2693_v6  ;;  %vm529_vm12 = vcmp.ge.f32.partialorder %v516_v9, 0.0  ;;  %v542_v12 = vmul.f32 0.01, %v516_v9  ;;  %v497_v13 = vmul.f32 %v3610_v3, %v462_v11  ;;  %v2720_v6 = vld [vmem:[%s4133_s4 + $0x118] sm:$0xff]  ;;  %v2778_v11 = vld [vmem:[%s4133_s4 + $0x288] sm:$0xff] }
 0x138   : > { %2971 = vmatprep.subr.mxu1 %v3313_v1  ;;  %v464_v15 = vpop.f32.mrf.mxu0 }
 0x139   : > { %2972 = vmatpush3.msra.mxu1 %v2692_v10  ;;  %v555_v17 = vsel %vm529_vm12, %v516_v9, %v542_v12  ;;  %v517_v18 = vadd.f32 %v3615_v5, %v497_v13  ;;  %v2779_v9 = vld [vmem:[%s4133_s4 + $0x290] sm:$0xff]  ;;  %v2718_v10 = vld [vmem:[%s4133_s4 + $0x108] sm:$0xff]  ;;  %v2717_v12 = vld [vmem:[%s4133_s4 + $0x100] sm:$0xff] }
 0x13a   : > { %2974 = vmatmul.mubr.msk.f32.vlgmr.msra.gmra.mxu1 %vm560_vm4, %v812_v16  ;;  %2976 = vmatprep.subr.mxu1 %v3313_v1  ;;  %569 = vst.msk [vmem:[#allocation2 + $0x40] sm:$0xff] %vm560_vm4, %v555_v17  ;;  %v467_v20 = vpop.f32.mrf.mxu0  ;;  %v2777_v13 = vld [vmem:[%s4133_s4 + $0x280] sm:$0xff]  ;;  %v2725_v15 = vld [vmem:[%s4133_s4 + $0x138] sm:$0xff]  ;;  %v2724_v16 = vld [vmem:[%s4133_s4 + $0x130] sm:$0xff] }
 0x13b   : > { %2977 = vmatpush3.msra.mxu1 %v2700_v14  ;;  %2984 = vmatprep.mubr.msk.f32.mxu1 %vm3314_vm2, %v3313_v1  ;;  %vm530_vm13 = vcmp.ge.f32.partialorder %v517_v18, 0.0  ;;  %v543_v21 = vmul.f32 0.01, %v517_v18  ;;  %v498_v22 = vmul.f32 %v3610_v3, %v467_v20  ;;  %v1212_v14 = vld [vmem:[#allocation2 + $0x20] sm:$0xf] }
 0x13c   : > { %2978 = vmatprep.subr.mxu1 %v3313_v1  ;;  %v469_v25 = vpop.f32.mrf.mxu0  ;;  %v2722_v20 = vld [vmem:[%s4133_s4 + $0x120] sm:$0xff] }
 0x13d   : > { %2979 = vmatpush3.msra.mxu1 %v2699_v19  ;;  %v556_v26 = vsel %vm530_vm13, %v517_v18, %v543_v21  ;;  %v1692_v27 = vld [vmem:[#allocation2 + $0x38] sm:$0xf]  ;;  %v518_v28 = vadd.f32 %v3615_v5, %v498_v22  ;;  %v2723_v18 = vld [vmem:[%s4133_s4 + $0x128] sm:$0xff]  ;;  %v2789_v21 = vld [vmem:[%s4133_s4 + $0x2d0] sm:$0xff] }
 0x13e   : > { %2980 = vmatprep.subr.mxu1 %v3313_v1  ;;  %570 = vst.msk [vmem:[#allocation2 + $0x48] sm:$0xff] %vm560_vm4, %v556_v26  ;;  %3095 = vmatmul.mubr.msk.f32.vlgmr.msra.gmra.mxu0 %vm560_vm4, %v1692_v27  ;;  %v472_v31 = vpop.f32.mrf.mxu0  ;;  %v2790_v19 = vld [vmem:[%s4133_s4 + $0x2d8] sm:$0xff]  ;;  %v2788_v25 = vld [vmem:[%s4133_s4 + $0x2c8] sm:$0xff]  ;;  %v2787_v27 = vld [vmem:[%s4133_s4 + $0x2c0] sm:$0xff] }
 0x13f   : > { %2981 = vmatpush3.msra.mxu1 %v2698_v23  ;;  %3109 = vmatpush3.msra.mxu0 %v2760_v24  ;;  %vm531_vm14 = vcmp.ge.f32.partialorder %v518_v28, 0.0  ;;  %v544_v33 = vmul.f32 0.01, %v518_v28  ;;  %v499_v34 = vmul.f32 %v3610_v3, %v472_v31  ;;  %v2730_v22 = vld [vmem:[%s4133_s4 + $0x158] sm:$0xff]  ;;  %v1292_v23 = vld [vmem:[#allocation2 + $0x24] sm:$0xf] }
 0x140   : > { %2982 = vmatprep.subr.mxu1 %v3313_v1  ;;  %3110 = vmatprep.subr.mxu0 %v3313_v1  ;;  %v474_v36 = vpop.f32.mrf.mxu0  ;;  %v2729_v24 = vld [vmem:[%s4133_s4 + $0x150] sm:$0xff]  ;;  %v2728_v26 = vld [vmem:[%s4133_s4 + $0x148] sm:$0xff] }
 0x141   : > { %2983 = vmatpush3.msra.mxu1 %v2697_v29  ;;  %3111 = vmatpush3.msra.mxu0 %v2759_v30  ;;  %v557_v37 = vsel %vm531_vm14, %v518_v28, %v544_v33  ;;  %v519_v38 = vadd.f32 %v3615_v5, %v499_v34  ;;  %v1852_v51 = vld [vmem:[#allocation2 + $0x40] sm:$0xf]  ;;  %v1372_v29 = vld [vmem:[#allocation2 + $0x28] sm:$0xf]  ;;  %v2735_v30 = vld [vmem:[%s4133_s4 + $0x178] sm:$0xff] }
 0x142   : > { %2985 = vmatmul.mubr.msk.f32.vlgmr.msra.gmra.mxu1 %vm560_vm4, %v892_v32  ;;  %2987 = vmatprep.subr.mxu1 %v3313_v1  ;;  %571 = vst.msk [vmem:[#allocation2 + $0x50] sm:$0xff] %vm560_vm4, %v557_v37  ;;  %v477_v41 = vpop.f32.mrf.mxu0  ;;  %v2727_v28 = vld [vmem:[%s4133_s4 + $0x140] sm:$0xff]  ;;  %v2734_v32 = vld [vmem:[%s4133_s4 + $0x170] sm:$0xff]  ;;  %v2800_v33 = vld [vmem:[%s4133_s4 + $0x318] sm:$0xff] }
 0x143   : > { %2988 = vmatpush3.msra.mxu1 %v2705_v35  ;;  %2995 = vmatprep.mubr.msk.f32.mxu1 %vm3314_vm2, %v3313_v1  ;;  %vm532_vm15 = vcmp.ge.f32.partialorder %v519_v38, 0.0  ;;  %v545_v42 = vmul.f32 0.01, %v519_v38  ;;  %v500_v43 = vmul.f32 %v3610_v3, %v477_v41  ;;  %v2702_v3 = vld [vmem:[%s4133_s4 + $0xa0] sm:$0xff]  ;;  %v2733_v34 = vld [vmem:[%s4133_s4 + $0x168] sm:$0xff]  ;;  %v2799_v35 = vld [vmem:[%s4133_s4 + $0x310] sm:$0xff] }
 0x144   : > { %2989 = vmatprep.subr.mxu1 %v3313_v1  ;;  %3112 = vmatprep.subr.mxu0 %v3313_v1  ;;  %v479_v46 = vpop.f32.mrf.mxu0  ;;  %v2732_v36 = vld [vmem:[%s4133_s4 + $0x160] sm:$0xff]  ;;  %v2798_v37 = vld [vmem:[%s4133_s4 + $0x308] sm:$0xff] }
 0x145   : > { %2990 = vmatpush3.msra.mxu1 %v2704_v39  ;;  %3113 = vmatpush3.msra.mxu0 %v2758_v40  ;;  %v558_v47 = vsel %vm532_vm15, %v519_v38, %v545_v42  ;;  %v520_v48 = vadd.f32 %v3615_v5, %v500_v43  ;;  %v2710_v5 = vld [vmem:[%s4133_s4 + $0xd8] sm:$0xff]  ;;  %v2012_v0 = vld [vmem:[#allocation2 + $0x48] sm:$0xf]  ;;  %v1452_v39 = vld [vmem:[#allocation2 + $0x2c] sm:$0xf] }
 0x146   : > { %2991 = vmatprep.subr.mxu1 %v3313_v1  ;;  %3114 = vmatprep.subr.mxu0 %v3313_v1  ;;  %572 = vst.msk [vmem:[#allocation2 + $0x58] sm:$0xff] %vm560_vm4, %v558_v47  ;;  %v2740_v38 = vld [vmem:[%s4133_s4 + $0x198] sm:$0xff]  ;;  %v2739_v40 = vld [vmem:[%s4133_s4 + $0x190] sm:$0xff]  ;;  %v2797_v41 = vld [vmem:[%s4133_s4 + $0x300] sm:$0xff] }
 0x147   : > { %2992 = vmatpush3.msra.mxu1 %v2703_v44  ;;  %3115 = vmatpush3.msra.mxu0 %v2757_v45  ;;  %vm533_vm0 = vcmp.ge.f32.partialorder %v520_v48, 0.0  ;;  %v546_v49 = vmul.f32 0.01, %v520_v48  ;;  %v2738_v42 = vld [vmem:[%s4133_s4 + $0x188] sm:$0xff]  ;;  %v2737_v44 = vld [vmem:[%s4133_s4 + $0x180] sm:$0xff]  ;;  %v2745_v46 = vld [vmem:[%s4133_s4 + $0x1b8] sm:$0xff] }
 0x148   : > { %2993 = vmatprep.subr.mxu1 %v3313_v1  ;;  %3116 = vmatprep.mubr.msk.f32.mxu0 %vm3314_vm2, %v3313_v1  ;;  %v1532_v45 = vld [vmem:[#allocation2 + $0x30] sm:$0xf] }
 0x149   : > { %2994 = vmatpush3.msra.mxu1 %v2702_v3  ;;  %3130 = vmatprep.subr.mxu0 %v3313_v1  ;;  %v559_v52 = vsel %vm533_vm0, %v520_v48, %v546_v49  ;;  %v2172_v17 = vld [vmem:[#allocation2 + $0x50] sm:$0xf]  ;;  %v2743_v48 = vld [vmem:[%s4133_s4 + $0x1a8] sm:$0xff]  ;;  %v2742_v3 = vld [vmem:[%s4133_s4 + $0x1a0] sm:$0xff] }
 0x14a   : > { %2996 = vmatmul.mubr.msk.f32.vlgmr.msra.gmra.mxu1 %vm560_vm4, %v972_v50  ;;  %2998 = vmatprep.subr.mxu1 %v3313_v1  ;;  %574 = vst.msk [vmem:[#allocation2 + $0x60] sm:$0xf] %vm573_vm1, %v559_v52  ;;  %v2744_v47 = vld [vmem:[%s4133_s4 + $0x1b0] sm:$0xff]  ;;  %v2755_v49 = vld [vmem:[%s4133_s4 + $0x1f8] sm:$0xff]  ;;  %v2752_v52 = vld [vmem:[%s4133_s4 + $0x1e0] sm:$0xff] }
 0x14b   : > { %2999 = vmatpush3.msra.mxu1 %v2710_v5  ;;  %3006 = vmatprep.mubr.msk.f32.mxu1 %vm3314_vm2, %v3313_v1  ;;  %v1612_v5 = vld [vmem:[#allocation2 + $0x34] sm:$0xf] }
 0x14c   : > { %3000 = vmatprep.subr.mxu1 %v3313_v1  ;;  %3117 = vmatmul.mubr.msk.f32.vlgmr.msra.gmra.mxu0 %vm560_vm4, %v1852_v51  ;;  %v2754_v50 = vld [vmem:[%s4133_s4 + $0x1f0] sm:$0xff]  ;;  %v2753_v51 = vld [vmem:[%s4133_s4 + $0x1e8] sm:$0xff] }
 0x14d   : > { %3001 = vmatpush3.msra.mxu1 %v2709_v53  ;;  %3131 = vmatpush3.msra.mxu0 %v2770_v54  ;;  %v2332_v31 = vld [vmem:[#allocation2 + $0x58] sm:$0xf]  ;;  %v1772_v54 = vld [vmem:[#allocation2 + $0x3c] sm:$0xf] }
 0x14e   : > { %3002 = vmatprep.subr.mxu1 %v3313_v1  ;;  %3132 = vmatprep.subr.mxu0 %v3313_v1  ;;  %v2765_v53 = vld [vmem:[%s4133_s4 + $0x238] sm:$0xff] }
 0x14f   : > { %3003 = vmatpush3.msra.mxu1 %v2708_v55  ;;  %3133 = vmatpush3.msra.mxu0 %v2769_v56  ;;  %v2764_v55 = vld [vmem:[%s4133_s4 + $0x230] sm:$0xff]  ;;  %v2763_v56 = vld [vmem:[%s4133_s4 + $0x228] sm:$0xff] }
 0x150   : > { %3004 = vmatprep.subr.mxu1 %v3313_v1  ;;  %3134 = vmatprep.subr.mxu0 %v3313_v1 }
 0x151   : > { %3005 = vmatpush3.msra.mxu1 %v2707_v57  ;;  %3135 = vmatpush3.msra.mxu0 %v2768_v58  ;;  %v2492_v43 = vld [vmem:[#allocation2 + $0x60] sm:$0xf]  ;;  %v2775_v58 = vld [vmem:[%s4133_s4 + $0x278] sm:$0xff] }
 0x152   : > { %3007 = vmatmul.mubr.msk.f32.vlgmr.msra.gmra.mxu1 %vm560_vm4, %v1052_v59  ;;  %3009 = vmatprep.subr.mxu1 %v3313_v1  ;;  %v2762_v57 = vld [vmem:[%s4133_s4 + $0x220] sm:$0xff] }
 0x153   : > { %3010 = vmatpush3.msra.mxu1 %v2715_v60  ;;  %3017 = vmatprep.mubr.msk.f32.mxu1 %vm3314_vm2, %v3313_v1  ;;  %v1932_v59 = vld [vmem:[#allocation2 + $0x44] sm:$0xf]  ;;  %v2774_v60 = vld [vmem:[%s4133_s4 + $0x270] sm:$0xff] }
 0x154   : > { %3011 = vmatprep.subr.mxu1 %v3313_v1  ;;  %3136 = vmatprep.subr.mxu0 %v3313_v1 }
 0x155   : > { %3012 = vmatpush3.msra.mxu1 %v2714_v61  ;;  %3137 = vmatpush3.msra.mxu0 %v2767_v62  ;;  %v2773_v61 = vld [vmem:[%s4133_s4 + $0x268] sm:$0xff]  ;;  %v2772_v62 = vld [vmem:[%s4133_s4 + $0x260] sm:$0xff] }
 0x156   : > { %3013 = vmatprep.subr.mxu1 %v3313_v1  ;;  %3138 = vmatprep.mubr.msk.f32.mxu0 %vm3314_vm2, %v3313_v1 }
 0x157   : > { %3014 = vmatpush3.msra.mxu1 %v2713_v63  ;;  %3152 = vmatprep.subr.mxu0 %v3313_v1  ;;  %v2785_v63 = vld [vmem:[%s4133_s4 + $0x2b8] sm:$0xff] }
 0x158   : > { %3015 = vmatprep.subr.mxu1 %v3313_v1  ;;  %3139 = vmatmul.mubr.msk.f32.vlgmr.msra.gmra.mxu0 %vm560_vm4, %v2012_v0  ;;  %v2092_v0 = vld [vmem:[#allocation2 + $0x4c] sm:$0xf] }
 0x159   : > { %3016 = vmatpush3.msra.mxu1 %v2712_v2  ;;  %3153 = vmatpush3.msra.mxu0 %v2780_v4  ;;  %v2784_v2 = vld [vmem:[%s4133_s4 + $0x2b0] sm:$0xff]  ;;  %v2783_v4 = vld [vmem:[%s4133_s4 + $0x2a8] sm:$0xff] }
 0x15a   : > { %3018 = vmatmul.mubr.msk.f32.vlgmr.msra.gmra.mxu1 %vm560_vm4, %v1132_v7  ;;  %3020 = vmatprep.subr.mxu1 %v3313_v1  ;;  %v2795_v7 = vld [vmem:[%s4133_s4 + $0x2f8] sm:$0xff] }
 0x15b   : > { %3021 = vmatpush3.msra.mxu1 %v2720_v6  ;;  %3028 = vmatprep.mubr.msk.f32.mxu1 %vm3314_vm2, %v3313_v1  ;;  %v2782_v6 = vld [vmem:[%s4133_s4 + $0x2a0] sm:$0xff] }
 0x15c   : > { %3022 = vmatprep.subr.mxu1 %v3313_v1  ;;  %3154 = vmatprep.subr.mxu0 %v3313_v1 }
 0x15d   : > { %3023 = vmatpush3.msra.mxu1 %v2719_v8  ;;  %3155 = vmatpush3.msra.mxu0 %v2779_v9  ;;  %v2252_v8 = vld [vmem:[#allocation2 + $0x54] sm:$0xf] }
 0x15e   : > { %3024 = vmatprep.subr.mxu1 %v3313_v1  ;;  %3156 = vmatprep.subr.mxu0 %v3313_v1  ;;  %v2794_v9 = vld [vmem:[%s4133_s4 + $0x2f0] sm:$0xff] }
 0x15f   : > { %3025 = vmatpush3.msra.mxu1 %v2718_v10  ;;  %3157 = vmatpush3.msra.mxu0 %v2778_v11  ;;  %v2793_v10 = vld [vmem:[%s4133_s4 + $0x2e8] sm:$0xff]  ;;  %v2792_v11 = vld [vmem:[%s4133_s4 + $0x2e0] sm:$0xff] }
 0x160   : > { %3026 = vmatprep.subr.mxu1 %v3313_v1  ;;  %3158 = vmatprep.subr.mxu0 %v3313_v1 }
 0x161   : > { %3027 = vmatpush3.msra.mxu1 %v2717_v12  ;;  %3159 = vmatpush3.msra.mxu0 %v2777_v13  ;;  %v2412_v12 = vld [vmem:[#allocation2 + $0x5c] sm:$0xf] }
 0x162   : > { %3029 = vmatmul.mubr.msk.f32.vlgmr.msra.gmra.mxu1 %vm560_vm4, %v1212_v14  ;;  %3031 = vmatprep.subr.mxu1 %v3313_v1 }
 0x163   : > { %3032 = vmatpush3.msra.mxu1 %v2725_v15  ;;  %3039 = vmatprep.mubr.msk.f32.mxu1 %vm3314_vm2, %v3313_v1 }
 0x164   : > { %3033 = vmatprep.subr.mxu1 %v3313_v1  ;;  %3160 = vmatprep.mubr.msk.f32.mxu0 %vm3314_vm2, %v3313_v1 }
 0x165   : > { %3034 = vmatpush3.msra.mxu1 %v2724_v16  ;;  %3174 = vmatprep.subr.mxu0 %v3313_v1 }
 0x166   : > { %3035 = vmatprep.subr.mxu1 %v3313_v1  ;;  %3161 = vmatmul.mubr.msk.f32.vlgmr.msra.gmra.mxu0 %vm560_vm4, %v2172_v17 }
 0x167   : > { %3036 = vmatpush3.msra.mxu1 %v2723_v18  ;;  %3175 = vmatpush3.msra.mxu0 %v2790_v19 }
 0x168   : > { %3037 = vmatprep.subr.mxu1 %v3313_v1  ;;  %3176 = vmatprep.subr.mxu0 %v3313_v1 }
 0x169   : > { %3038 = vmatpush3.msra.mxu1 %v2722_v20  ;;  %3177 = vmatpush3.msra.mxu0 %v2789_v21 }
 0x16a   : > { %3040 = vmatmul.mubr.msk.f32.vlgmr.msra.gmra.mxu1 %vm560_vm4, %v1292_v23  ;;  %3042 = vmatprep.subr.mxu1 %v3313_v1 }
 0x16b   : > { %3043 = vmatpush3.msra.mxu1 %v2730_v22  ;;  %3050 = vmatprep.mubr.msk.f32.mxu1 %vm3314_vm2, %v3313_v1 }
 0x16c   : > { %3044 = vmatprep.subr.mxu1 %v3313_v1  ;;  %3178 = vmatprep.subr.mxu0 %v3313_v1 }
 0x16d   : > { %3045 = vmatpush3.msra.mxu1 %v2729_v24  ;;  %3179 = vmatpush3.msra.mxu0 %v2788_v25 }
 0x16e   : > { %3046 = vmatprep.subr.mxu1 %v3313_v1  ;;  %3180 = vmatprep.subr.mxu0 %v3313_v1 }
 0x16f   : > { %3047 = vmatpush3.msra.mxu1 %v2728_v26  ;;  %3181 = vmatpush3.msra.mxu0 %v2787_v27 }
 0x170   : > { %3048 = vmatprep.subr.mxu1 %v3313_v1  ;;  %3182 = vmatprep.mubr.msk.f32.mxu0 %vm3314_vm2, %v3313_v1 }
 0x171   : > { %3049 = vmatpush3.msra.mxu1 %v2727_v28  ;;  %3196 = vmatprep.subr.mxu0 %v3313_v1 }
 0x172   : > { %3051 = vmatmul.mubr.msk.f32.vlgmr.msra.gmra.mxu1 %vm560_vm4, %v1372_v29  ;;  %3053 = vmatprep.subr.mxu1 %v3313_v1 }
 0x173   : > { %3054 = vmatpush3.msra.mxu1 %v2735_v30  ;;  %3061 = vmatprep.mubr.msk.f32.mxu1 %vm3314_vm2, %v3313_v1 }
 0x174   : > { %3055 = vmatprep.subr.mxu1 %v3313_v1  ;;  %3183 = vmatmul.mubr.msk.f32.vlgmr.msra.gmra.mxu0 %vm560_vm4, %v2332_v31 }
 0x175   : > { %3056 = vmatpush3.msra.mxu1 %v2734_v32  ;;  %3197 = vmatpush3.msra.mxu0 %v2800_v33 }
 0x176   : > { %3057 = vmatprep.subr.mxu1 %v3313_v1  ;;  %3198 = vmatprep.subr.mxu0 %v3313_v1 }
 0x177   : > { %3058 = vmatpush3.msra.mxu1 %v2733_v34  ;;  %3199 = vmatpush3.msra.mxu0 %v2799_v35 }
 0x178   : > { %3059 = vmatprep.subr.mxu1 %v3313_v1  ;;  %3200 = vmatprep.subr.mxu0 %v3313_v1 }
 0x179   : > { %3060 = vmatpush3.msra.mxu1 %v2732_v36  ;;  %3201 = vmatpush3.msra.mxu0 %v2798_v37 }
 0x17a   : > { %3062 = vmatmul.mubr.msk.f32.vlgmr.msra.gmra.mxu1 %vm560_vm4, %v1452_v39  ;;  %3064 = vmatprep.subr.mxu1 %v3313_v1 }
 0x17b   : > { %3065 = vmatpush3.msra.mxu1 %v2740_v38  ;;  %3072 = vmatprep.mubr.msk.f32.mxu1 %vm3314_vm2, %v3313_v1 }
 0x17c   : > { %3066 = vmatprep.subr.mxu1 %v3313_v1  ;;  %3202 = vmatprep.subr.mxu0 %v3313_v1 }
 0x17d   : > { %3067 = vmatpush3.msra.mxu1 %v2739_v40  ;;  %3203 = vmatpush3.msra.mxu0 %v2797_v41 }
 0x17e   : > { %3068 = vmatprep.subr.mxu1 %v3313_v1  ;;  %3204 = vmatprep.mubr.msk.f32.mxu0 %vm3314_vm2, %v3313_v1 }
 0x17f   : > { %3069 = vmatpush3.msra.mxu1 %v2738_v42  ;;  %3205 = vmatmul.mubr.msk.f32.vlgmr.msra.gmra.mxu0 %vm560_vm4, %v2492_v43 }
 0x180   : > { %3070 = vmatprep.subr.mxu1 %v3313_v1 }
 0x181   : > { %3071 = vmatpush3.msra.mxu1 %v2737_v44 }
 0x182   : > { %3073 = vmatmul.mubr.msk.f32.vlgmr.msra.gmra.mxu1 %vm560_vm4, %v1532_v45  ;;  %3075 = vmatprep.subr.mxu1 %v3313_v1 }
 0x183   : > { %3076 = vmatpush3.msra.mxu1 %v2745_v46  ;;  %3083 = vmatprep.mubr.msk.f32.mxu1 %vm3314_vm2, %v3313_v1 }
 0x184   : > { %3077 = vmatprep.subr.mxu1 %v3313_v1 }
 0x185   : > { %3078 = vmatpush3.msra.mxu1 %v2744_v47 }
 0x186   : > { %3079 = vmatprep.subr.mxu1 %v3313_v1 }
 0x187   : > { %3080 = vmatpush3.msra.mxu1 %v2743_v48 }
 0x188   : > { %3081 = vmatprep.subr.mxu1 %v3313_v1 }
 0x189   : > { %3082 = vmatpush3.msra.mxu1 %v2742_v3 }
 0x18a   : > { %3084 = vmatmul.mubr.msk.f32.vlgmr.msra.gmra.mxu1 %vm560_vm4, %v1612_v5  ;;  %3097 = vmatprep.subr.mxu1 %v3313_v1 }
 0x18b   : > { %3098 = vmatpush3.msra.mxu1 %v2755_v49  ;;  %3105 = vmatprep.mubr.msk.f32.mxu1 %vm3314_vm2, %v3313_v1 }
 0x18c   : > { %3099 = vmatprep.subr.mxu1 %v3313_v1 }
 0x18d   : > { %3100 = vmatpush3.msra.mxu1 %v2754_v50 }
 0x18e   : > { %3101 = vmatprep.subr.mxu1 %v3313_v1 }
 0x18f   : > { %3102 = vmatpush3.msra.mxu1 %v2753_v51 }
 0x190   : > { %3103 = vmatprep.subr.mxu1 %v3313_v1 }
 0x191   : > { %3104 = vmatpush3.msra.mxu1 %v2752_v52 }
 0x192   : > { %3106 = vmatmul.mubr.msk.f32.vlgmr.msra.gmra.mxu1 %vm560_vm4, %v1772_v54  ;;  %3119 = vmatprep.subr.mxu1 %v3313_v1 }
 0x193   : > { %3120 = vmatpush3.msra.mxu1 %v2765_v53  ;;  %3127 = vmatprep.mubr.msk.f32.mxu1 %vm3314_vm2, %v3313_v1 }
 0x194   : > { %3121 = vmatprep.subr.mxu1 %v3313_v1 }
 0x195   : > { %3122 = vmatpush3.msra.mxu1 %v2764_v55 }
 0x196   : > { %3123 = vmatprep.subr.mxu1 %v3313_v1 }
 0x197   : > { %3124 = vmatpush3.msra.mxu1 %v2763_v56 }
 0x198   : > { %3125 = vmatprep.subr.mxu1 %v3313_v1 }
 0x199   : > { %3126 = vmatpush3.msra.mxu1 %v2762_v57 }
 0x19a   : > { %3128 = vmatmul.mubr.msk.f32.vlgmr.msra.gmra.mxu1 %vm560_vm4, %v1932_v59  ;;  %3141 = vmatprep.subr.mxu1 %v3313_v1 }
 0x19b   : > { %3142 = vmatpush3.msra.mxu1 %v2775_v58  ;;  %3149 = vmatprep.mubr.msk.f32.mxu1 %vm3314_vm2, %v3313_v1 }
 0x19c   : > { %3143 = vmatprep.subr.mxu1 %v3313_v1 }
 0x19d   : > { %3144 = vmatpush3.msra.mxu1 %v2774_v60 }
 0x19e   : > { %3145 = vmatprep.subr.mxu1 %v3313_v1 }
 0x19f   : > { %3146 = vmatpush3.msra.mxu1 %v2773_v61 }
 0x1a0   : > { %3147 = vmatprep.subr.mxu1 %v3313_v1 }
 0x1a1   : > { %3148 = vmatpush3.msra.mxu1 %v2772_v62 }
 0x1a2   : > { %3150 = vmatmul.mubr.msk.f32.vlgmr.msra.gmra.mxu1 %vm560_vm4, %v2092_v0  ;;  %3163 = vmatprep.subr.mxu1 %v3313_v1 }
 0x1a3   : > { %3164 = vmatpush3.msra.mxu1 %v2785_v63  ;;  %3171 = vmatprep.mubr.msk.f32.mxu1 %vm3314_vm2, %v3313_v1 }
 0x1a4   : > { %3165 = vmatprep.subr.mxu1 %v3313_v1 }
 0x1a5   : > { %3166 = vmatpush3.msra.mxu1 %v2784_v2 }
 0x1a6   : > { %3167 = vmatprep.subr.mxu1 %v3313_v1 }
 0x1a7   : > { %3168 = vmatpush3.msra.mxu1 %v2783_v4 }
 0x1a8   : > { %3169 = vmatprep.subr.mxu1 %v3313_v1 }
 0x1a9   : > { %3170 = vmatpush3.msra.mxu1 %v2782_v6 }
 0x1aa   : > { %3172 = vmatmul.mubr.msk.f32.vlgmr.msra.gmra.mxu1 %vm560_vm4, %v2252_v8  ;;  %3185 = vmatprep.subr.mxu1 %v3313_v1 }
 0x1ab   : > { %3186 = vmatpush3.msra.mxu1 %v2795_v7  ;;  %3193 = vmatprep.mubr.msk.f32.mxu1 %vm3314_vm2, %v3313_v1  ;;  %vm2584_vm2 = vcmask 27648  }
 0x1ac   : > { %3187 = vmatprep.subr.mxu1 %v3313_v1 }
 0x1ad   : > { %3188 = vmatpush3.msra.mxu1 %v2794_v9 }
 0x1ae   : > { %3189 = vmatprep.subr.mxu1 %v3313_v1 }
 0x1af   : > { %3190 = vmatpush3.msra.mxu1 %v2793_v10 }
 0x1b0   : > { %3191 = vmatprep.subr.mxu1 %v3313_v1 }
 0x1b1   : > { %3192 = vmatpush3.msra.mxu1 %v2792_v11 }
 0x1b2   : > { %3194 = vmatmul.mubr.msk.f32.vlgmr.msra.gmra.mxu1 %vm560_vm4, %v2412_v12 }
 0x1e2   : > { %v655_v13 = vpop.f32.mrf.mxu1 }
 0x1e4   : > { %v2942_v14 = vpop.f32.mrf.mxu1 }
 0x1ea   : > { %v728_v15 = vpop.f32.mrf.mxu1 }
 0x1eb   : > { %v729_v16 = vadd.f32 %v728_v15, %v655_v13 }
 0x1ec   : > { %v2953_v17 = vpop.f32.mrf.mxu1 }
 0x1f2   : > { %v807_v18 = vpop.f32.mrf.mxu1 }
 0x1f3   : > { %v811_v19 = vadd.f32 %v807_v18, %v729_v16 }
 0x1f4   : > { %v2964_v20 = vpop.f32.mrf.mxu1 }
 0x1fa   : > { %v887_v21 = vpop.f32.mrf.mxu1 }
 0x1fb   : > { %v891_v22 = vadd.f32 %v887_v21, %v811_v19  ;;  %v2802_v21 = vld [vmem:[%s4134_s5] ss:$0 sm:$0xff] }
 0x1fc   : > { %v2975_v23 = vpop.f32.mrf.mxu1 }
 0x1fe   : > { %v1767_v24 = vpop.f32.mrf.mxu0 }
 0x200   : > { %v3096_v25 = vpop.f32.mrf.mxu0 }
 0x202   : > { %v967_v26 = vpop.f32.mrf.mxu1 }
 0x203   : > { %v971_v27 = vadd.f32 %v967_v26, %v891_v22 }
 0x204   : > { %v2986_v1 = vpop.f32.mrf.mxu1 }
 0x20a   : > { %v1047_v28 = vpop.f32.mrf.mxu1 }
 0x20b   : > { %v1051_v29 = vadd.f32 %v1047_v28, %v971_v27 }
 0x20c   : > { %v2997_v30 = vpop.f32.mrf.mxu1  ;;  %v1927_v31 = vpop.f32.mrf.mxu0 }
 0x20e   : > { %v3118_v32 = vpop.f32.mrf.mxu0 }
 0x212   : > { %v1127_v33 = vpop.f32.mrf.mxu1 }
 0x213   : > { %v1131_v52 = vadd.f32 %v1127_v33, %v1051_v29 }
 0x214   : > { %v3008_v34 = vpop.f32.mrf.mxu1 }
 0x218   : > { %v2087_v35 = vpop.f32.mrf.mxu0 }
 0x21a   : > { %v1207_v36 = vpop.f32.mrf.mxu1  ;;  %v3140_v37 = vpop.f32.mrf.mxu0 }
 0x21b   : > { %v1211_v54 = vadd.f32 %v1207_v36, %v1131_v52 }
 0x21c   : > { %v3019_v38 = vpop.f32.mrf.mxu1 }
 0x222   : > { %v1287_v39 = vpop.f32.mrf.mxu1 }
 0x223   : > { %v1291_v55 = vadd.f32 %v1287_v39, %v1211_v54 }
 0x224   : > { %v3030_v40 = vpop.f32.mrf.mxu1 }
 0x226   : > { %v2247_v41 = vpop.f32.mrf.mxu0 }
 0x228   : > { %v3162_v42 = vpop.f32.mrf.mxu0 }
 0x22a   : > { %v1367_v43 = vpop.f32.mrf.mxu1 }
 0x22b   : > { %v1371_v56 = vadd.f32 %v1367_v43, %v1291_v55 }
 0x22c   : > { %v3041_v44 = vpop.f32.mrf.mxu1 }
 0x232   : > { %v1447_v45 = vpop.f32.mrf.mxu1 }
 0x233   : > { %v1451_v58 = vadd.f32 %v1447_v45, %v1371_v56 }
 0x234   : > { %v3052_v46 = vpop.f32.mrf.mxu1  ;;  %v2407_v47 = vpop.f32.mrf.mxu0 }
 0x236   : > { %v3184_v48 = vpop.f32.mrf.mxu0 }
 0x23a   : > { %v1527_v3 = vpop.f32.mrf.mxu1 }
 0x23b   : > { %v1531_v60 = vadd.f32 %v1527_v3, %v1451_v58 }
 0x23c   : > { %v3063_v49 = vpop.f32.mrf.mxu1 }
 0x23f   : > { %v2567_v5 = vpop.f32.mrf.mxu0 }
 0x241   : > { %v3206_v50 = vpop.f32.mrf.mxu0 }
 0x242   : > { %v1607_v51 = vpop.f32.mrf.mxu1 }
 0x243   : > { %v1611_v61 = vadd.f32 %v1607_v51, %v1531_v60 }
 0x244   : > { %v3074_v53 = vpop.f32.mrf.mxu1 }
 0x24a   : > { %v1687_v57 = vpop.f32.mrf.mxu1 }
 0x24b   : > { %v1691_v62 = vadd.f32 %v1687_v57, %v1611_v61 }
 0x24c   : > { %v3085_v59 = vpop.f32.mrf.mxu1 }
 0x24d   : > { %v1771_v2 = vadd.f32 %v1767_v24, %v1691_v62 }
 0x252   : > { %v1847_v63 = vpop.f32.mrf.mxu1 }
 0x253   : > { %v1851_v4 = vadd.f32 %v1847_v63, %v1771_v2 }
 0x254   : > { %v3107_v0 = vpop.f32.mrf.mxu1 }
 0x255   : > { %v1931_v7 = vadd.f32 %v1927_v31, %v1851_v4 }
 0x25a   : > { %v2007_v6 = vpop.f32.mrf.mxu1 }
 0x25b   : > { %v2011_v9 = vadd.f32 %v2007_v6, %v1931_v7 }
 0x25c   : > { %v3129_v8 = vpop.f32.mrf.mxu1 }
 0x25d   : > { %v2091_v10 = vadd.f32 %v2087_v35, %v2011_v9 }
 0x262   : > { %v2167_v11 = vpop.f32.mrf.mxu1 }
 0x263   : > { %v2171_v12 = vadd.f32 %v2167_v11, %v2091_v10 }
 0x264   : > { %v3151_v13 = vpop.f32.mrf.mxu1 }
 0x265   : > { %v2251_v14 = vadd.f32 %v2247_v41, %v2171_v12 }
 0x26a   : > { %v2327_v15 = vpop.f32.mrf.mxu1 }
 0x26b   : > { %v2331_v17 = vadd.f32 %v2327_v15, %v2251_v14 }
 0x26c   : > { %v3173_v16 = vpop.f32.mrf.mxu1 }
 0x26d   : > { %v2411_v18 = vadd.f32 %v2407_v47, %v2331_v17 }
 0x272   : > { %v2487_v19 = vpop.f32.mrf.mxu1 }
 0x273   : > { %v2491_v20 = vadd.f32 %v2487_v19, %v2411_v18 }
 0x274   : > { %v3195_v22 = vpop.f32.mrf.mxu1 }
 0x275   : > { %v2571_v23 = vadd.f32 %v2567_v5, %v2491_v20 }
 0x277   : > { %v2579_v24 = vadd.f32 %v2802_v21, %v2571_v23 }
 0x279   : > { %v2580_v25 = vmul.f32 0.5, %v2579_v24 }
 0x27b   : > { %3249 = vtanh.f32 %v2580_v25 }
 0x288   : > { %v3250_v26 = vpop.eup %3249 }
 0x289   : > { %v2582_v27 = vmul.f32 0.5, %v3250_v26 }
 0x28b   : > { %v2583_v1 = vadd.f32 0.5, %v2582_v27 }
 0x28d   : > { %2585 = vst.msk [vmem:[%s244_s18] sm:$0xf] %vm2584_vm2, %v2583_v1 }
 0x28e   : > { %3264 = shalt.err (!%p3261_p3)
}
 0x28f   : > { %s3265_s12 = scalar_lea.hbm %s2598_s28, 64  ;;  %s3269_s15 = scalar_lea.hbm %s4135_s6, 128 }
 0x290   : > { %p3266_p4 = scmp.ne.s32.totalorder %s2598_s28, %s3265_s12  ;;  %p3270_p9 = scmp.lt.s32.totalorder %s2598_s28, %s4135_s6 }
 0x291   : > { %p3271_p10 = scmp.lt.s32.totalorder %s3269_s15, %s3265_s12 }
 0x292   : > { %p3267_p7 = pnand %p3266_p4, %p3389_p5 }
 0x293   : > { %p3272_p11 = por %p3271_p10, %p3270_p9 }
 0x294   : > { %p3268_p8 = pneg %p3267_p7 }
 0x296   : > { %p3273_p12 = pnand %p3272_p11, %p3268_p8 }
 0x298   : > { %3276 = shalt.err (!%p3273_p12)
}
 0x299   : > { %3208 = dma.vmem_to_hbm [thread:$0]  (%p3389_p5), %s2601_s19, 64, %s2598_s28, %s2587_s9  }
 0x29a PF: > { %p3214_p13 = scmp.ge.s32.totalorder %s3311_s24, 2  ;;  %s2612_s18 = sand.u32 1, %s3299_s21  }
 0x29b   : > { %s2613_s20 = scalar_lea.sflag [#allocation4], %s2612_s18 }
 0x29c   : > { %p3211_p0 = pnand %p3214_p13, %p3393_p6 }
 0x29e   : > { %p3212_p1 = pneg %p3211_p0 }
 0x2a0   : > { %3294 = dma.done.wait (%p3212_p1), %s2613_s20, 64  }
 0x2a1   : > { %3296 = vsyncadd (%p3212_p1), %s2613_s20, 4294967232  ;;  %p16_p2 = scmp.ge.s32.totalorder %s3376_s27, 4   ;;  %s4138_s21 = smov %s3303_s22 }
 0x2a2   : > { %s4139_s22 = smov %s3307_s23  ;;  %s4140_s23 = smov %s3387_s30 }
 0x2a3   : > { %s4141_s24 = smov %s3376_s27  ;;  %18 = sbr.rel (!%p16_p2) target bundleno = 3 (0x3), region = 103 }
 0x2a8   :  { %2618 = vsyncpa [#allocation4], 1 }
 0x2a9   :  { %2620 = vsyncpa [#allocation4 + $0x1], 1 }

</bundles_post_ra>
